<compile_context>
chip_gen: v7x
topology: tpu7x:2x2x1
jax: 0.10.0
libtpu: 0.0.40
codegen_flags: <defaults>
</compile_context>

<pallas_src>
import jax
import jax.numpy as jnp
import numpy as np
from jax.experimental import pallas as pl
from jax.experimental.pallas import tpu as pltpu


ROW_TILE_TARGET = 1024  # packed rows per grid step (each carries `pack` pixels)


def _round_up(x, m):
    return (x + m - 1) // m * m


def _mxu_width():
    """Best-effort MXU width (lanes) for the local TPU generation."""
    try:
        kind = jax.devices()[0].device_kind.lower()
    except Exception:
        return 256
    for small in ("v2", "v3", "v4", "v5"):
        if small in kind:
            return 128
    return 256


def choose_pack(num_channels):
    """Pixels packed per lane-row: make the RM-chain GEMM K=2*G*C fill the MXU."""
    g = max(1, _mxu_width() // (2 * num_channels))
    return int(min(g, 8))


# ---------------------------------------------------------------------------
# Kernel
# ---------------------------------------------------------------------------
def _prbnet_kernel(
    x_ref,        # (R, G*C_in)        bf16   G pixels lane-packed per row
    w_stem_ref,   # (G*C_in, 4*G*C)    bf16   4 SHPS stems, block-diag over groups
    b_stem_ref,   # (1, 4*G*C)         f32
    w_rm1_ref,    # (4*G*C, 2*G*C)     bf16   RM step 1 (stem -> [y1|z1])
    w_chain_ref,  # (2*G*C, 2*G*C)     bf16   RM steps 2/3, chain-state part
    w_sb2_ref,    # (4*G*C, 2*G*C)     bf16   RM step 2, stem-side contribution
    w_sb3_ref,    # (4*G*C, 2*G*C)     bf16   RM step 3, stem-side contribution
    b_rm_ref,     # (1, 2*G*C)         f32
    w_att_ref,    # (2*G*C, G*C)       bf16   AFM gate ([y3|z3] -> gate)
    b_att_ref,    # (1, G*C)           f32
    w_out_ref,    # (G*C, G*C_out)     bf16   AFM output projection (block-diag)
    b_out_ref,    # (1, G*C_out)       f32
    out_ref,      # (R, G*C_out)       bf16   lane-dense packed output
):
    f32 = jnp.float32
    bf16 = jnp.bfloat16
    gc = w_att_ref.shape[1]  # G * C : lane width of one logical block

    def mm(a, w_ref):
        return jnp.dot(a, w_ref[...], preferred_element_type=f32)

    # ---- 4 SHPS stems: one block-diagonal GEMM ------------------------------
    stem = jnp.maximum(mm(x_ref[...], w_stem_ref) + b_stem_ref[...], 0.0)
    stem_bf = stem.astype(bf16)

    # ---- stem-side RM contributions for steps 2/3 (off the serial chain) ----
    sb2 = mm(stem_bf, w_sb2_ref)   # per group: [s2@Wb for y | s3@Wb for z]
    sb3 = mm(stem_bf, w_sb3_ref)   # per group: [s1@Wb for y | s4@Wb for z]

    b_rm = b_rm_ref[...]

    # ---- RM chain, y and z chains lane-stacked (state layout [y | z]) -------
    chain = jnp.maximum(mm(stem_bf, w_rm1_ref) + b_rm, 0.0)                    # y1|z1
    chain = jnp.maximum(mm(chain.astype(bf16), w_chain_ref) + sb2 + b_rm, 0.0)  # y2|z2
    chain = jnp.maximum(mm(chain.astype(bf16), w_chain_ref) + sb3 + b_rm, 0.0)  # y3|z3

    y3 = chain[:, :gc]
    z3 = chain[:, gc:]

    # ---- AFM: attentive fusion of the two chains -----------------------------
    gate = jax.nn.sigmoid(mm(chain.astype(bf16), w_att_ref) + b_att_ref[...])
    fused = gate * y3 + (1.0 - gate) * z3
    out = jnp.maximum(mm(fused.astype(bf16), w_out_ref) + b_out_ref[...], 0.0)

    out_ref[...] = out.astype(out_ref.dtype)


# ---------------------------------------------------------------------------
# Parameters
# ---------------------------------------------------------------------------
def init_prbnet_params(key, in_channels, num_channels):
    """Deterministic f32 parameter init matching the stand-in sub-modules."""
    ks = jax.random.split(key, 10)
    c_in, c = in_channels, num_channels
    scale_in = 1.0 / jnp.sqrt(jnp.float32(c_in))
    scale_c = 1.0 / jnp.sqrt(jnp.float32(c))
    return {
        "w_branch": jax.random.normal(ks[0], (4, c_in, c), jnp.float32) * scale_in,
        "b_branch": jax.random.normal(ks[1], (4, 1, c), jnp.float32) * 0.01,
        "w_rm_a": jax.random.normal(ks[2], (c, c), jnp.float32) * scale_c,
        "w_rm_b": jax.random.normal(ks[3], (c, c), jnp.float32) * scale_c,
        "b_rm": jax.random.normal(ks[4], (1, c), jnp.float32) * 0.01,
        "w_att_a": jax.random.normal(ks[5], (c, c), jnp.float32) * scale_c,
        "w_att_b": jax.random.normal(ks[6], (c, c), jnp.float32) * scale_c,
        "b_att": jax.random.normal(ks[7], (1, c), jnp.float32) * 0.01,
        "w_out": jax.random.normal(ks[8], (c, c), jnp.float32) * scale_c,
        "b_out": jax.random.normal(ks[9], (1, c), jnp.float32) * 0.01,
    }


def pack_prbnet_params(params, pack):
    """Assemble block-diagonal / selection-folded weights for `pack` lane groups.

    Lane layout of every intermediate: block-major, group-minor, channel-last.
      stem  : blocks (s1, s2, s3, s4)          -> 4*G*C lanes
      chain : blocks (y, z)                    -> 2*G*C lanes
      gate / fused / out : single block        ->   G*C(_out) lanes
    """
    G = int(pack)
    w_branch = np.asarray(params["w_branch"], np.float32)   # (4, c_in, c)
    b_branch = np.asarray(params["b_branch"], np.float32)   # (4, 1, c)
    wa = np.asarray(params["w_rm_a"], np.float32)
    wb = np.asarray(params["w_rm_b"], np.float32)
    b_rm = np.asarray(params["b_rm"], np.float32)
    waa = np.asarray(params["w_att_a"], np.float32)
    wab = np.asarray(params["w_att_b"], np.float32)
    b_att = np.asarray(params["b_att"], np.float32)
    w_out = np.asarray(params["w_out"], np.float32)
    b_out = np.asarray(params["b_out"], np.float32)

    c_in, c = w_branch.shape[1], w_branch.shape[2]
    c_out = w_out.shape[1]

    def off(block, g):
        return (block * G + g) * c

    # --- stem: x (group-minor C_in) -> [s1|s2|s3|s4] blocks -------------------
    w_stem = np.zeros((G * c_in, 4 * G * c), np.float32)
    b_stem = np.zeros((1, 4 * G * c), np.float32)
    for g in range(G):
        for k in range(4):
            w_stem[g * c_in:(g + 1) * c_in, off(k, g):off(k, g) + c] = w_branch[k]
            b_stem[:, off(k, g):off(k, g) + c] = b_branch[k]

    # --- RM step 1: y1 = RM(s4, s3), z1 = RM(s1, s2) (single GEMM from stem) --
    w_rm1 = np.zeros((4 * G * c, 2 * G * c), np.float32)
    for g in range(G):
        w_rm1[off(3, g):off(3, g) + c, off(0, g):off(0, g) + c] = wa   # s4 -> y
        w_rm1[off(2, g):off(2, g) + c, off(0, g):off(0, g) + c] = wb   # s3 -> y
        w_rm1[off(0, g):off(0, g) + c, off(1, g):off(1, g) + c] = wa   # s1 -> z
        w_rm1[off(1, g):off(1, g) + c, off(1, g):off(1, g) + c] = wb   # s2 -> z

    # --- RM steps 2/3 chain-state part: block-diag over (2 chains x G groups) -
    w_chain = np.zeros((2 * G * c, 2 * G * c), np.float32)
    for j in range(2):
        for g in range(G):
            w_chain[off(j, g):off(j, g) + c, off(j, g):off(j, g) + c] = wa

    # --- RM steps 2/3 stem-side contributions (selection folded into weights) -
    w_sb2 = np.zeros((4 * G * c, 2 * G * c), np.float32)  # y2 += s2@Wb, z2 += s3@Wb
    w_sb3 = np.zeros((4 * G * c, 2 * G * c), np.float32)  # y3 += s1@Wb, z3 += s4@Wb
    for g in range(G):
        w_sb2[off(1, g):off(1, g) + c, off(0, g):off(0, g) + c] = wb
        w_sb2[off(2, g):off(2, g) + c, off(1, g):off(1, g) + c] = wb
        w_sb3[off(0, g):off(0, g) + c, off(0, g):off(0, g) + c] = wb
        w_sb3[off(3, g):off(3, g) + c, off(1, g):off(1, g) + c] = wb

    b_rm_big = np.tile(b_rm, (1, 2 * G))

    # --- AFM gate: [y3 | z3] -> gate ------------------------------------------
    w_att = np.zeros((2 * G * c, G * c), np.float32)
    for g in range(G):
        w_att[off(0, g):off(0, g) + c, g * c:(g + 1) * c] = waa
        w_att[off(1, g):off(1, g) + c, g * c:(g + 1) * c] = wab
    b_att_big = np.tile(b_att, (1, G))

    # --- AFM output projection: block-diag over groups (lane-dense store) -----
    w_out_big = np.zeros((G * c, G * c_out), np.float32)
    for g in range(G):
        w_out_big[g * c:(g + 1) * c, g * c_out:(g + 1) * c_out] = w_out
    b_out_big = np.tile(b_out, (1, G))

    bf = jnp.bfloat16
    return {
        "w_stem": jnp.asarray(w_stem, bf), "b_stem": jnp.asarray(b_stem),
        "w_rm1": jnp.asarray(w_rm1, bf), "w_chain": jnp.asarray(w_chain, bf),
        "w_sb2": jnp.asarray(w_sb2, bf), "w_sb3": jnp.asarray(w_sb3, bf),
        "b_rm": jnp.asarray(b_rm_big),
        "w_att": jnp.asarray(w_att, bf), "b_att": jnp.asarray(b_att_big),
        "w_out": jnp.asarray(w_out_big, bf), "b_out": jnp.asarray(b_out_big),
    }


# ---------------------------------------------------------------------------
# Forward wrapper
# ---------------------------------------------------------------------------
@jax.jit
def prbnet_forward(x_nchw, packed):
    """x_nchw: (N, C_in, H, W) float32 -> (N, C_out, H, W) float32."""
    n, c_in, h, w = x_nchw.shape
    G = packed["w_stem"].shape[0] // c_in
    g_cout = packed["w_out"].shape[1]
    c_out = g_cout // G

    num_px = n * h * w
    x_rows = jnp.transpose(x_nchw, (0, 2, 3, 1)).reshape(num_px, c_in)
    x_rows = x_rows.astype(jnp.bfloat16)

    # --- tile selection (packed rows) -----------------------------------------
    rows_packed = pl.cdiv(num_px, G)
    tile = ROW_TILE_TARGET
    if rows_packed < 2 * tile:
        # small inputs: keep >= 2 grid steps so both v7x TensorCores get work
        tile = max(16, _round_up(pl.cdiv(rows_packed, 2), 16))
    nt = pl.cdiv(rows_packed, tile)
    total_px = nt * tile * G
    if total_px != num_px:
        x_rows = jnp.pad(x_rows, ((0, total_px - num_px), (0, 0)))

    # lane-pack G consecutive pixels per row (free, contiguous reshape)
    x_packed = x_rows.reshape(nt * tile, G * c_in)

    weight_names = ("w_stem", "b_stem", "w_rm1", "w_chain", "w_sb2", "w_sb3",
                    "b_rm", "w_att", "b_att", "w_out", "b_out")
    weights = [packed[k] for k in weight_names]
    rep_specs = [pl.BlockSpec(wt.shape, lambda i: (0, 0)) for wt in weights]

    out_packed = pl.pallas_call(
        _prbnet_kernel,
        out_shape=jax.ShapeDtypeStruct((nt * tile, g_cout), jnp.bfloat16),
        grid_spec=pltpu.PrefetchScalarGridSpec(
            num_scalar_prefetch=0,
            grid=(nt,),
            in_specs=[pl.BlockSpec((tile, G * c_in), lambda i: (i, 0))] + rep_specs,
            out_specs=pl.BlockSpec((tile, g_cout), lambda i: (i, 0)),
        ),
        compiler_params=pltpu.CompilerParams(
            dimension_semantics=("parallel",),
            vmem_limit_bytes=32 * 1024 * 1024,   # explicit (v5e scoped default is 16 MiB)
        ),
    )(x_packed, *weights)

    # undo lane packing (free contiguous reshape), one transpose to NCHW, upcast
    out_rows = out_packed.reshape(total_px, c_out)[:num_px]
    out = jnp.transpose(out_rows.reshape(n, h, w, c_out), (0, 3, 1, 2))
    return out.astype(jnp.float32)


# ---------------------------------------------------------------------------
# Pure-JAX reference (same bf16-operand / f32-accumulate numerics, small weights)
# ---------------------------------------------------------------------------
def _reference_forward(x_nchw, params):
    n, c_in, h, w = x_nchw.shape
    bf = jnp.bfloat16
    x = jnp.transpose(x_nchw, (0, 2, 3, 1)).reshape(n * h * w, c_in).astype(bf)

    def branch(i):
        return jnp.maximum(
            jnp.dot(x, params["w_branch"][i].astype(bf),
                    preferred_element_type=jnp.float32) + params["b_branch"][i], 0.0)

    s1, s2, s3, s4 = branch(0), branch(1), branch(2), branch(3)
    wa = params["w_rm_a"].astype(bf)
    wb = params["w_rm_b"].astype(bf)

    def rm(a, b):
        acc = (jnp.dot(a.astype(bf), wa, preferred_element_type=jnp.float32)
               + jnp.dot(b.astype(bf), wb, preferred_element_type=jnp.float32)
               + params["b_rm"])
        return jnp.maximum(acc, 0.0)

    y3 = rm(rm(rm(s4, s3), s2), s1)
    z3 = rm(rm(rm(s1, s2), s3), s4)

    g = jax.nn.sigmoid(
        jnp.dot(y3.astype(bf), params["w_att_a"].astype(bf),
                preferred_element_type=jnp.float32)
        + jnp.dot(z3.astype(bf), params["w_att_b"].astype(bf),
                  preferred_element_type=jnp.float32)
        + params["b_att"])
    fused = g * y3 + (1.0 - g) * z3
    out = jnp.maximum(
        jnp.dot(fused.astype(bf), params["w_out"].astype(bf),
                preferred_element_type=jnp.float32) + params["b_out"], 0.0)
    # mirror the kernel's bf16 output store
    out = out.astype(bf).astype(jnp.float32)
    c_out = out.shape[-1]
    return jnp.transpose(out.reshape(n, h, w, c_out), (0, 3, 1, 2))


if __name__ == "__main__":
    key = jax.random.PRNGKey(0)
    k_x, k_p = jax.random.split(key)

    # Small shapes consistent with the module: batch=2, in_channels=4,
    # spatial=16x16, num_channels (feature width) = 32.
    N, C_IN, H, W = 2, 4, 16, 16
    NUM_CHANNELS = 32

    x = jax.random.normal(k_x, (N, C_IN, H, W), jnp.float32)
    params = init_prbnet_params(k_p, C_IN, NUM_CHANNELS)
    pack = choose_pack(NUM_CHANNELS)        # 4 on v6e/v7x (256-wide MXU), 2 on v5e
    packed = pack_prbnet_params(params, pack)

    out = prbnet_forward(x, packed)
    out = jax.block_until_ready(out)
    assert out.shape == (N, NUM_CHANNELS, H, W), out.shape

    ref = _reference_forward(x, params)
    max_err = float(jnp.max(jnp.abs(out - ref)))
    assert jnp.allclose(out, ref, atol=1e-2, rtol=1e-2), f"mismatch vs reference, max_err={max_err}"

    print("KERNEL_OK")
</pallas_src>

<mosaic_0001>
module attributes {stable_mosaic.version = 11 : i64} {
  func.func @_prbnet_kernel(%arg0: i32, %arg1: memref<64x16xbf16, #tpu.memory_space<vmem>>, %arg2: memref<16x512xbf16, #tpu.memory_space<vmem>>, %arg3: memref<1x512xf32, #tpu.memory_space<vmem>>, %arg4: memref<512x256xbf16, #tpu.memory_space<vmem>>, %arg5: memref<256x256xbf16, #tpu.memory_space<vmem>>, %arg6: memref<512x256xbf16, #tpu.memory_space<vmem>>, %arg7: memref<512x256xbf16, #tpu.memory_space<vmem>>, %arg8: memref<1x256xf32, #tpu.memory_space<vmem>>, %arg9: memref<256x128xbf16, #tpu.memory_space<vmem>>, %arg10: memref<1x128xf32, #tpu.memory_space<vmem>>, %arg11: memref<128x128xbf16, #tpu.memory_space<vmem>>, %arg12: memref<1x128xf32, #tpu.memory_space<vmem>>, %arg13: memref<64x128xbf16, #tpu.memory_space<vmem>>) attributes {dimension_semantics = [#tpu.dimension_semantics<parallel>], iteration_bounds = array<i64: 2>, scalar_prefetch = 0 : i64, scratch_operands = 0 : i64, tpu.core_type = #tpu.core_type<tc>, window_params = [{transform_indices = @transform_0, window_bounds = array<i64: 64, 16>}, {pipeline_mode = #tpu.pipeline_mode<synchronous>, transform_indices = @transform_1, window_bounds = array<i64: 16, 512>}, {pipeline_mode = #tpu.pipeline_mode<synchronous>, transform_indices = @transform_2, window_bounds = array<i64: 1, 512>}, {pipeline_mode = #tpu.pipeline_mode<synchronous>, transform_indices = @transform_3, window_bounds = array<i64: 512, 256>}, {pipeline_mode = #tpu.pipeline_mode<synchronous>, transform_indices = @transform_4, window_bounds = array<i64: 256, 256>}, {pipeline_mode = #tpu.pipeline_mode<synchronous>, transform_indices = @transform_5, window_bounds = array<i64: 512, 256>}, {pipeline_mode = #tpu.pipeline_mode<synchronous>, transform_indices = @transform_6, window_bounds = array<i64: 512, 256>}, {pipeline_mode = #tpu.pipeline_mode<synchronous>, transform_indices = @transform_7, window_bounds = array<i64: 1, 256>}, {pipeline_mode = #tpu.pipeline_mode<synchronous>, transform_indices = @transform_8, window_bounds = array<i64: 256, 128>}, {pipeline_mode = #tpu.pipeline_mode<synchronous>, transform_indices = @transform_9, window_bounds = array<i64: 1, 128>}, {pipeline_mode = #tpu.pipeline_mode<synchronous>, transform_indices = @transform_10, window_bounds = array<i64: 128, 128>}, {pipeline_mode = #tpu.pipeline_mode<synchronous>, transform_indices = @transform_11, window_bounds = array<i64: 1, 128>}, {transform_indices = @transform_12, window_bounds = array<i64: 64, 128>}]} {
    %c0 = arith.constant 0 : index
    %c0_0 = arith.constant 0 : index
    %0 = vector.load %arg1[%c0, %c0_0] : memref<64x16xbf16, #tpu.memory_space<vmem>>, vector<64x16xbf16>
    %c0_1 = arith.constant 0 : index
    %c0_2 = arith.constant 0 : index
    %1 = vector.load %arg2[%c0_1, %c0_2] : memref<16x512xbf16, #tpu.memory_space<vmem>>, vector<16x512xbf16>
    %cst = arith.constant dense<0.000000e+00> : vector<64x512xf32>
    %2 = tpu.matmul %0, %1, %cst {dimension_numbers = #tpu.dot_dimension_numbers<[1], [0], [0], [1], [0, 0, 1, 1], [], []>} : vector<64x16xbf16>, vector<16x512xbf16>, vector<64x512xf32> -> vector<64x512xf32>
    %c0_3 = arith.constant 0 : index
    %c0_4 = arith.constant 0 : index
    %3 = vector.load %arg3[%c0_3, %c0_4] : memref<1x512xf32, #tpu.memory_space<vmem>>, vector<1x512xf32>
    %4 = vector.broadcast %3 : vector<1x512xf32> to vector<64x512xf32>
    %5 = arith.addf %2, %4 : vector<64x512xf32>
    %cst_5 = arith.constant 0.000000e+00 : f32
    %6 = vector.broadcast %cst_5 : f32 to vector<64x512xf32>
    %7 = arith.maximumf %5, %6 : vector<64x512xf32>
    %8 = arith.truncf %7 : vector<64x512xf32> to vector<64x512xbf16>
    %c0_6 = arith.constant 0 : index
    %c0_7 = arith.constant 0 : index
    %9 = vector.load %arg6[%c0_6, %c0_7] : memref<512x256xbf16, #tpu.memory_space<vmem>>, vector<512x256xbf16>
    %cst_8 = arith.constant dense<0.000000e+00> : vector<64x256xf32>
    %10 = tpu.matmul %8, %9, %cst_8 {dimension_numbers = #tpu.dot_dimension_numbers<[1], [0], [0], [1], [0, 0, 1, 1], [], []>} : vector<64x512xbf16>, vector<512x256xbf16>, vector<64x256xf32> -> vector<64x256xf32>
    %c0_9 = arith.constant 0 : index
    %c0_10 = arith.constant 0 : index
    %11 = vector.load %arg7[%c0_9, %c0_10] : memref<512x256xbf16, #tpu.memory_space<vmem>>, vector<512x256xbf16>
    %cst_11 = arith.constant dense<0.000000e+00> : vector<64x256xf32>
    %12 = tpu.matmul %8, %11, %cst_11 {dimension_numbers = #tpu.dot_dimension_numbers<[1], [0], [0], [1], [0, 0, 1, 1], [], []>} : vector<64x512xbf16>, vector<512x256xbf16>, vector<64x256xf32> -> vector<64x256xf32>
    %c0_12 = arith.constant 0 : index
    %c0_13 = arith.constant 0 : index
    %13 = vector.load %arg8[%c0_12, %c0_13] : memref<1x256xf32, #tpu.memory_space<vmem>>, vector<1x256xf32>
    %c0_14 = arith.constant 0 : index
    %c0_15 = arith.constant 0 : index
    %14 = vector.load %arg4[%c0_14, %c0_15] : memref<512x256xbf16, #tpu.memory_space<vmem>>, vector<512x256xbf16>
    %cst_16 = arith.constant dense<0.000000e+00> : vector<64x256xf32>
    %15 = tpu.matmul %8, %14, %cst_16 {dimension_numbers = #tpu.dot_dimension_numbers<[1], [0], [0], [1], [0, 0, 1, 1], [], []>} : vector<64x512xbf16>, vector<512x256xbf16>, vector<64x256xf32> -> vector<64x256xf32>
    %16 = vector.broadcast %13 : vector<1x256xf32> to vector<64x256xf32>
    %17 = arith.addf %15, %16 : vector<64x256xf32>
    %cst_17 = arith.constant 0.000000e+00 : f32
    %18 = vector.broadcast %cst_17 : f32 to vector<64x256xf32>
    %19 = arith.maximumf %17, %18 : vector<64x256xf32>
    %20 = arith.truncf %19 : vector<64x256xf32> to vector<64x256xbf16>
    %c0_18 = arith.constant 0 : index
    %c0_19 = arith.constant 0 : index
    %21 = vector.load %arg5[%c0_18, %c0_19] : memref<256x256xbf16, #tpu.memory_space<vmem>>, vector<256x256xbf16>
    %cst_20 = arith.constant dense<0.000000e+00> : vector<64x256xf32>
    %22 = tpu.matmul %20, %21, %cst_20 {dimension_numbers = #tpu.dot_dimension_numbers<[1], [0], [0], [1], [0, 0, 1, 1], [], []>} : vector<64x256xbf16>, vector<256x256xbf16>, vector<64x256xf32> -> vector<64x256xf32>
    %23 = arith.addf %22, %10 : vector<64x256xf32>
    %24 = vector.broadcast %13 : vector<1x256xf32> to vector<64x256xf32>
    %25 = arith.addf %23, %24 : vector<64x256xf32>
    %cst_21 = arith.constant 0.000000e+00 : f32
    %26 = vector.broadcast %cst_21 : f32 to vector<64x256xf32>
    %27 = arith.maximumf %25, %26 : vector<64x256xf32>
    %28 = arith.truncf %27 : vector<64x256xf32> to vector<64x256xbf16>
    %c0_22 = arith.constant 0 : index
    %c0_23 = arith.constant 0 : index
    %29 = vector.load %arg5[%c0_22, %c0_23] : memref<256x256xbf16, #tpu.memory_space<vmem>>, vector<256x256xbf16>
    %cst_24 = arith.constant dense<0.000000e+00> : vector<64x256xf32>
    %30 = tpu.matmul %28, %29, %cst_24 {dimension_numbers = #tpu.dot_dimension_numbers<[1], [0], [0], [1], [0, 0, 1, 1], [], []>} : vector<64x256xbf16>, vector<256x256xbf16>, vector<64x256xf32> -> vector<64x256xf32>
    %31 = arith.addf %30, %12 : vector<64x256xf32>
    %32 = vector.broadcast %13 : vector<1x256xf32> to vector<64x256xf32>
    %33 = arith.addf %31, %32 : vector<64x256xf32>
    %cst_25 = arith.constant 0.000000e+00 : f32
    %34 = vector.broadcast %cst_25 : f32 to vector<64x256xf32>
    %35 = arith.maximumf %33, %34 : vector<64x256xf32>
    %36 = vector.extract_strided_slice %35 {offsets = [0, 0], sizes = [64, 128], strides = [1, 1]} : vector<64x256xf32> to vector<64x128xf32>
    %37 = vector.extract_strided_slice %35 {offsets = [0, 128], sizes = [64, 128], strides = [1, 1]} : vector<64x256xf32> to vector<64x128xf32>
    %38 = arith.truncf %35 : vector<64x256xf32> to vector<64x256xbf16>
    %c0_26 = arith.constant 0 : index
    %c0_27 = arith.constant 0 : index
    %39 = vector.load %arg9[%c0_26, %c0_27] : memref<256x128xbf16, #tpu.memory_space<vmem>>, vector<256x128xbf16>
    %cst_28 = arith.constant dense<0.000000e+00> : vector<64x128xf32>
    %40 = tpu.matmul %38, %39, %cst_28 {dimension_numbers = #tpu.dot_dimension_numbers<[1], [0], [0], [1], [0, 0, 1, 1], [], []>} : vector<64x256xbf16>, vector<256x128xbf16>, vector<64x128xf32> -> vector<64x128xf32>
    %c0_29 = arith.constant 0 : index
    %c0_30 = arith.constant 0 : index
    %41 = vector.load %arg10[%c0_29, %c0_30] : memref<1x128xf32, #tpu.memory_space<vmem>>, vector<1x128xf32>
    %42 = vector.broadcast %41 : vector<1x128xf32> to vector<64x128xf32>
    %43 = arith.addf %40, %42 : vector<64x128xf32>
    %44 = arith.negf %43 : vector<64x128xf32>
    %45 = math.exp %44 : vector<64x128xf32>
    %cst_31 = arith.constant 1.000000e+00 : f32
    %46 = vector.broadcast %cst_31 : f32 to vector<64x128xf32>
    %47 = arith.addf %46, %45 : vector<64x128xf32>
    %48 = arith.divf %46, %47 : vector<64x128xf32>
    %49 = arith.mulf %48, %36 : vector<64x128xf32>
    %cst_32 = arith.constant 1.000000e+00 : f32
    %50 = vector.broadcast %cst_32 : f32 to vector<64x128xf32>
    %51 = arith.subf %50, %48 : vector<64x128xf32>
    %52 = arith.mulf %51, %37 : vector<64x128xf32>
    %53 = arith.addf %49, %52 : vector<64x128xf32>
    %54 = arith.truncf %53 : vector<64x128xf32> to vector<64x128xbf16>
    %c0_33 = arith.constant 0 : index
    %c0_34 = arith.constant 0 : index
    %55 = vector.load %arg11[%c0_33, %c0_34] : memref<128x128xbf16, #tpu.memory_space<vmem>>, vector<128x128xbf16>
    %cst_35 = arith.constant dense<0.000000e+00> : vector<64x128xf32>
    %56 = tpu.matmul %54, %55, %cst_35 {dimension_numbers = #tpu.dot_dimension_numbers<[1], [0], [0], [1], [0, 0, 1, 1], [], []>} : vector<64x128xbf16>, vector<128x128xbf16>, vector<64x128xf32> -> vector<64x128xf32>
    %c0_36 = arith.constant 0 : index
    %c0_37 = arith.constant 0 : index
    %57 = vector.load %arg12[%c0_36, %c0_37] : memref<1x128xf32, #tpu.memory_space<vmem>>, vector<1x128xf32>
    %58 = vector.broadcast %57 : vector<1x128xf32> to vector<64x128xf32>
    %59 = arith.addf %56, %58 : vector<64x128xf32>
    %cst_38 = arith.constant 0.000000e+00 : f32
    %60 = vector.broadcast %cst_38 : f32 to vector<64x128xf32>
    %61 = arith.maximumf %59, %60 : vector<64x128xf32>
    %62 = arith.truncf %61 : vector<64x128xf32> to vector<64x128xbf16>
    %c0_39 = arith.constant 0 : index
    %c0_40 = arith.constant 0 : index
    %63 = vector.load %arg13[%c0_39, %c0_40] : memref<64x128xbf16, #tpu.memory_space<vmem>>, vector<64x128xbf16>
    tpu.vector_store %arg13[%c0_39, %c0_40], %62 {strides = array<i32>} : memref<64x128xbf16, #tpu.memory_space<vmem>>, vector<64x128xbf16>,
    return
  }
  func.func @transform_0(%arg0: i32) -> (i32, i32) {
    %c0_i32 = arith.constant 0 : i32
    %c0_i32_0 = arith.constant 0 : i32
    return %arg0, %c0_i32 : i32, i32
  }
  func.func @transform_1(%arg0: i32) -> (i32, i32) {
    %c0_i32 = arith.constant 0 : i32
    %c0_i32_0 = arith.constant 0 : i32
    %c0_i32_1 = arith.constant 0 : i32
    return %c0_i32, %c0_i32_0 : i32, i32
  }
  func.func @transform_2(%arg0: i32) -> (i32, i32) {
    %c0_i32 = arith.constant 0 : i32
    %c0_i32_0 = arith.constant 0 : i32
    %c0_i32_1 = arith.constant 0 : i32
    return %c0_i32, %c0_i32_0 : i32, i32
  }
  func.func @transform_3(%arg0: i32) -> (i32, i32) {
    %c0_i32 = arith.constant 0 : i32
    %c0_i32_0 = arith.constant 0 : i32
    %c0_i32_1 = arith.constant 0 : i32
    return %c0_i32, %c0_i32_0 : i32, i32
  }
  func.func @transform_4(%arg0: i32) -> (i32, i32) {
    %c0_i32 = arith.constant 0 : i32
    %c0_i32_0 = arith.constant 0 : i32
    %c0_i32_1 = arith.constant 0 : i32
    return %c0_i32, %c0_i32_0 : i32, i32
  }
  func.func @transform_5(%arg0: i32) -> (i32, i32) {
    %c0_i32 = arith.constant 0 : i32
    %c0_i32_0 = arith.constant 0 : i32
    %c0_i32_1 = arith.constant 0 : i32
    return %c0_i32, %c0_i32_0 : i32, i32
  }
  func.func @transform_6(%arg0: i32) -> (i32, i32) {
    %c0_i32 = arith.constant 0 : i32
    %c0_i32_0 = arith.constant 0 : i32
    %c0_i32_1 = arith.constant 0 : i32
    return %c0_i32, %c0_i32_0 : i32, i32
  }
  func.func @transform_7(%arg0: i32) -> (i32, i32) {
    %c0_i32 = arith.constant 0 : i32
    %c0_i32_0 = arith.constant 0 : i32
    %c0_i32_1 = arith.constant 0 : i32
    return %c0_i32, %c0_i32_0 : i32, i32
  }
  func.func @transform_8(%arg0: i32) -> (i32, i32) {
    %c0_i32 = arith.constant 0 : i32
    %c0_i32_0 = arith.constant 0 : i32
    %c0_i32_1 = arith.constant 0 : i32
    return %c0_i32, %c0_i32_0 : i32, i32
  }
  func.func @transform_9(%arg0: i32) -> (i32, i32) {
    %c0_i32 = arith.constant 0 : i32
    %c0_i32_0 = arith.constant 0 : i32
    %c0_i32_1 = arith.constant 0 : i32
    return %c0_i32, %c0_i32_0 : i32, i32
  }
  func.func @transform_10(%arg0: i32) -> (i32, i32) {
    %c0_i32 = arith.constant 0 : i32
    %c0_i32_0 = arith.constant 0 : i32
    %c0_i32_1 = arith.constant 0 : i32
    return %c0_i32, %c0_i32_0 : i32, i32
  }
  func.func @transform_11(%arg0: i32) -> (i32, i32) {
    %c0_i32 = arith.constant 0 : i32
    %c0_i32_0 = arith.constant 0 : i32
    %c0_i32_1 = arith.constant 0 : i32
    return %c0_i32, %c0_i32_0 : i32, i32
  }
  func.func @transform_12(%arg0: i32) -> (i32, i32) {
    %c0_i32 = arith.constant 0 : i32
    %c0_i32_0 = arith.constant 0 : i32
    return %arg0, %c0_i32 : i32, i32
  }
}

</mosaic_0001>

<bundles_post_ra>
// kernel: prbnet_forward.1
= control target key start
LH: loop header
LB: loop body
LE: loop exit
PB: predicated region body
PF: predicated region fallthrough
CT: control target
= control target key end

     0   :  { %s5555_s0 = inlined_call_operand.vmem [shape: bf16[128,16], index: 0, kind: input, shape index: {}]   ;;  %s5556_s1 = inlined_call_operand.vmem [shape: bf16[16,512], index: 1, kind: input, shape index: {}]   ;;  %s5557_s2 = inlined_call_operand.hbm [shape: f32[1,512], index: 2, kind: input, shape index: {}]   ;;  %s5558_s3 = inlined_call_operand.vmem [shape: bf16[512,256], index: 3, kind: input, shape index: {}]   ;;  %s5559_s4 = inlined_call_operand.vmem [shape: bf16[256,256], index: 4, kind: input, shape index: {}]   ;;  %s5560_s5 = inlined_call_operand.hbm [shape: bf16[512,256], index: 5, kind: input, shape index: {}]   ;;  %s5561_s6 = inlined_call_operand.hbm [shape: bf16[512,256], index: 6, kind: input, shape index: {}]   ;;  %s5562_s7 = inlined_call_operand.vmem [shape: f32[1,256], index: 7, kind: input, shape index: {}]   ;;  %s5563_s8 = inlined_call_operand.hbm [shape: bf16[256,128], index: 8, kind: input, shape index: {}]   ;;  %s5564_s9 = inlined_call_operand.hbm [shape: f32[1,128], index: 9, kind: input, shape index: {}]   ;;  %s5565_s10 = inlined_call_operand.vmem [shape: bf16[128,128], index: 10, kind: input, shape index: {}]   ;;  %s5566_s11 = inlined_call_operand.hbm [shape: f32[1,128], index: 11, kind: input, shape index: {}]   ;;  %s5567_s12 = inlined_call_operand.vmem [shape: bf16[128,128], index: 12, kind: output, shape index: {}]  }
   0x1   :  { %5574 = sst [smem:[#allocation16_spill]] %s5560_s5 }
   0x2   :  { %5575 = sst [smem:[#allocation17_spill]] %s5567_s12 }
   0x3   :  { %17 = vsyncpa [#allocation3], 0 }
   0x4   :  { %18 = vsyncpa [#allocation5], 0 }
   0x5   :  { %19 = vsyncpa [#allocation8], 0 }
   0x6   :  { %20 = vsyncpa [#allocation11], 0  ;;  %s4661_s21 = smov 0  }
   0x7 LB: > { %s4585_s22 = smov [#allocation4]   ;;  %s5568_s24 = sadd.s32 4294967295, %s4583_s21   ;;  %s4583_s21 = sphi %s4661_s21, %s26_s21  }
   0x8   : > { %s346_s23 = sshll.u32 %s4585_s22, 4  ;;  %p3411_p0 = scmp.ge.s32.totalorder %s4583_s21, 1  ;;  %s4675_s23 = int_to_ptr.vmem [resolvable:$true] %s346_s23 }
   0x9   : > { %p314_p1 = scmp.lt.s32.totalorder %s4583_s21, 3  ;;  %p4671_p2 = scmp.eq.s32.totalorder %s5568_s24, 0 }
   0xa   : > { %s4586_s27 = smov [#allocation7]   ;;  %s4587_s30 = smov [#allocation2]  }
   0xb   : > { %s5576_s25 = scalar_select %p4671_p2, 1, 0 }
   0xc   : > { %p4677_p3 = pnand %p3411_p0, %p314_p1  ;;  %s375_s28 = sshll.u32 %s4586_s27, 4  ;;  %s4683_s28 = int_to_ptr.vmem [resolvable:$true] %s375_s28 }
   0xd   : > { %s4691_s13 = sshll.u32 %s4587_s30, 4  ;;  %s5579_s5 = sld [smem:[#allocation16_spill]]  ;;  %s331_s13 = int_to_ptr.vmem [resolvable:$true] %s4691_s13 }
   0xe   : > { %s5577_s26 = scalar_select %p4677_p3, 1, 0 }
   0xf   : > { %p3941_p4 = pneg %p4677_p3 }
  0x11   : > { %p4687_p5 = pnand %p4671_p2, %p3941_p4 }
  0x13   : > { %s4393_s16 = scalar_lea.hbm %s5579_s5, 8192  ;;  %p4701_p7 = pneg %p4687_p5 }
  0x14   : > { %p4394_p6 = scmp.ne.s32.totalorder %s5579_s5, %s4393_s16  ;;  %p4400_p10 = scmp.lt.u32.totalorder %s4393_s16, %s5579_s5 }
  0x16   : > { %p4396_p8 = pnand %p4701_p7, %p4394_p6 }
  0x18   : > { %p4397_p9 = pneg %p4396_p8 }
  0x1a   : > { %p4402_p11 = pnand %p4400_p10, %p4397_p9 }
  0x1c   : > { %4405 = shalt.err (!%p4402_p11)
}
  0x1d   : > { %s4406_s27 = scalar_lea.vmem %s4675_s23, 8192  ;;  %p4414_p1 = scmp.lt.s32.totalorder %s4675_s23, %s4675_s23 }
  0x1e   : > { %p4407_p12 = scmp.ne.s32.totalorder %s4675_s23, %s4406_s27  ;;  %p4415_p4 = scmp.lt.s32.totalorder %s4406_s27, %s4406_s27 }
  0x20   : > { %p4409_p13 = pnand %p4407_p12, %p4701_p7  ;;  %p4416_p6 = por %p4415_p4, %p4414_p1 }
  0x22   : > { %p4410_p0 = pneg %p4409_p13 }
  0x24   : > { %p4417_p8 = pnand %p4416_p6, %p4410_p0 }
  0x26   : > { %4420 = shalt.err (!%p4417_p8)
}
  0x27   : > { %s5569_s30 = smov 128   ;;  %s5570_s14 = smov 8  }
  0x28   : > { %3947 = dma.hbm_to_vmem [thread:$0]  (!%p4687_p5), %s5579_s5, 8192, %s4675_s23, [#allocation5], %s5569_s30, %s5569_s30, %s5570_s14  }
  0x29   : > { %s4421_s20 = scalar_lea.hbm %s5563_s8, 2048 }
  0x2a   : > { %p4422_p9 = scmp.ne.s32.totalorder %s5563_s8, %s4421_s20  ;;  %p4428_p12 = scmp.lt.u32.totalorder %s4421_s20, %s5563_s8 }
  0x2c   : > { %p4424_p10 = pnand %p4422_p9, %p4701_p7 }
  0x2e   : > { %p4425_p11 = pneg %p4424_p10 }
  0x30   : > { %p4430_p13 = pnand %p4428_p12, %p4425_p11 }
  0x32   : > { %4433 = shalt.err (!%p4430_p13)
}
  0x33   : > { %s4434_s23 = scalar_lea.vmem %s4683_s28, 2048  ;;  %p4442_p6 = scmp.lt.s32.totalorder %s4683_s28, %s4683_s28 }
  0x34   : > { %p4435_p0 = scmp.ne.s32.totalorder %s4683_s28, %s4434_s23  ;;  %p4443_p8 = scmp.lt.s32.totalorder %s4434_s23, %s4434_s23 }
  0x36   : > { %p4437_p1 = pnand %p4435_p0, %p4701_p7  ;;  %p4444_p9 = por %p4443_p8, %p4442_p6 }
  0x38   : > { %p4438_p4 = pneg %p4437_p1 }
  0x3a   : > { %p4445_p10 = pnand %p4444_p9, %p4438_p4 }
  0x3c   : > { %4448 = shalt.err (!%p4445_p10)
}
  0x3d   : > { %s4590_s15 = smov 64   ;;  %s4591_s12 = smov 4  }
  0x3e   : > { %3953 = dma.hbm_to_vmem [thread:$0]  (!%p4687_p5), %s5563_s8, 2048, %s4683_s28, [#allocation8], %s4590_s15, %s4590_s15, %s4591_s12  }
  0x3f   : > { %s4592_s17 = smov [#allocation6]   ;;  %s4449_s27 = scalar_lea.hbm %s5557_s2, 64 }
  0x40   : > { %s359_s18 = sshll.u32 %s4592_s17, 4  ;;  %p4450_p11 = scmp.ne.s32.totalorder %s5557_s2, %s4449_s27  ;;  %s360_s18 = int_to_ptr.vmem [resolvable:$true] %s359_s18 }
  0x41   : > { %p4456_p0 = scmp.lt.u32.totalorder %s4449_s27, %s5557_s2 }
  0x42   : > { %p4452_p12 = pnand %p4450_p11, %p4701_p7 }
  0x44   : > { %p4453_p13 = pneg %p4452_p12 }
  0x46   : > { %p4458_p1 = pnand %p4456_p0, %p4453_p13 }
  0x48   : > { %4461 = shalt.err (!%p4458_p1)
}
  0x49   : > { %s4462_s28 = scalar_lea.vmem %s331_s13, 64  ;;  %p4470_p9 = scmp.lt.s32.totalorder %s331_s13, %s331_s13 }
  0x4a   : > { %p4463_p4 = scmp.ne.s32.totalorder %s331_s13, %s4462_s28  ;;  %p4471_p10 = scmp.lt.s32.totalorder %s4462_s28, %s4462_s28 }
  0x4c   : > { %p4465_p6 = pnand %p4463_p4, %p4701_p7  ;;  %p4472_p2 = por %p4471_p10, %p4470_p9 }
  0x4e   : > { %p4466_p8 = pneg %p4465_p6 }
  0x50   : > { %p4473_p3 = pnand %p4472_p2, %p4466_p8 }
  0x52   : > { %4476 = shalt.err (!%p4473_p3)
}
  0x53   : > { %3944 = dma.hbm_to_vmem [thread:$0]  (!%p4687_p5), %s5557_s2, 64, %s331_s13, [#allocation3]  }
  0x54   : > { %s4477_s12 = scalar_lea.hbm %s5561_s6, 8192 }
  0x55   : > { %p4478_p11 = scmp.ne.s32.totalorder %s5561_s6, %s4477_s12  ;;  %p4484_p3 = scmp.lt.u32.totalorder %s4477_s12, %s5561_s6 }
  0x57   : > { %p4480_p12 = pnand %p4478_p11, %p4701_p7 }
  0x59   : > { %p4481_p2 = pneg %p4480_p12 }
  0x5b   : > { %p4486_p13 = pnand %p4484_p3, %p4481_p2 }
  0x5d   : > { %4489 = shalt.err (!%p4486_p13)
}
  0x5e   : > { %s4490_s22 = scalar_lea.vmem %s360_s18, 8192  ;;  %p4498_p6 = scmp.lt.s32.totalorder %s360_s18, %s360_s18 }
  0x5f   : > { %p4491_p0 = scmp.ne.s32.totalorder %s360_s18, %s4490_s22  ;;  %p4499_p8 = scmp.lt.s32.totalorder %s4490_s22, %s4490_s22 }
  0x61   : > { %p4493_p1 = pnand %p4491_p0, %p4701_p7  ;;  %p4500_p9 = por %p4499_p8, %p4498_p6 }
  0x63   : > { %p4494_p4 = pneg %p4493_p1 }
  0x65   : > { %p4501_p10 = pnand %p4500_p9, %p4494_p4 }
  0x67   : > { %4504 = shalt.err (!%p4501_p10)
}
  0x68   : > { %s5581_s13 = smov 8   ;;  %s5582_s27 = smov 128  }
  0x69   : > { %3950 = dma.hbm_to_vmem [thread:$0]  (!%p4687_p5), %s5561_s6, 8192, %s360_s18, [#allocation5], %s5582_s27, %s5582_s27, %s5581_s13  }
  0x6a   : > { %s4593_s30 = smov [#allocation9]   ;;  %s4594_s5 = smov [#allocation10]  }
  0x6b   : > { %s389_s15 = sshll.u32 %s4593_s30, 4  ;;  %s403_s14 = sshll.u32 %s4594_s5, 4  ;;  %s390_s15 = int_to_ptr.vmem [resolvable:$true] %s389_s15  ;;  %s404_s14 = int_to_ptr.vmem [resolvable:$true] %s403_s14 }
  0x6c   : > { %s4505_s16 = scalar_lea.hbm %s5564_s9, 16 }
  0x6d   : > { %p4506_p11 = scmp.ne.s32.totalorder %s5564_s9, %s4505_s16  ;;  %p4512_p3 = scmp.lt.u32.totalorder %s4505_s16, %s5564_s9 }
  0x6f   : > { %p4508_p12 = pnand %p4506_p11, %p4701_p7 }
  0x71   : > { %p4509_p2 = pneg %p4508_p12 }
  0x73   : > { %p4514_p13 = pnand %p4512_p3, %p4509_p2 }
  0x75   : > { %4517 = shalt.err (!%p4514_p13)
}
  0x76   : > { %s4518_s18 = scalar_lea.vmem %s390_s15, 16  ;;  %s4525_s13 = scalar_lea.vmem %s390_s15, 32 }
  0x77   : > { %p4519_p0 = scmp.ne.s32.totalorder %s390_s15, %s4518_s18  ;;  %p4526_p6 = scmp.lt.s32.totalorder %s390_s15, %s390_s15 }
  0x78   : > { %p4527_p8 = scmp.lt.s32.totalorder %s4525_s13, %s4518_s18 }
  0x79   : > { %p4521_p1 = pnand %p4519_p0, %p4701_p7 }
  0x7a   : > { %p4528_p9 = por %p4527_p8, %p4526_p6 }
  0x7b   : > { %p4522_p4 = pneg %p4521_p1 }
  0x7d   : > { %p4529_p10 = pnand %p4528_p9, %p4522_p4 }
  0x7f   : > { %4532 = shalt.err (!%p4529_p10)
}
  0x80   : > { %3956 = dma.hbm_to_vmem [thread:$0]  (!%p4687_p5), %s5564_s9, 16, %s390_s15, [#allocation8]  }
  0x81   : > { %s4533_s12 = scalar_lea.hbm %s5566_s11, 16 }
  0x82   : > { %p4534_p11 = scmp.ne.s32.totalorder %s5566_s11, %s4533_s12  ;;  %p4540_p3 = scmp.lt.u32.totalorder %s4533_s12, %s5566_s11 }
  0x84   : > { %p4536_p12 = pnand %p4534_p11, %p4701_p7 }
  0x86   : > { %p4537_p2 = pneg %p4536_p12 }
  0x88   : > { %p4542_p13 = pnand %p4540_p3, %p4537_p2 }
  0x8a   : > { %4545 = shalt.err (!%p4542_p13)
}
  0x8b   : > { %s4546_s22 = scalar_lea.vmem %s404_s14, 16  ;;  %s4553_s15 = scalar_lea.vmem %s404_s14, 32 }
  0x8c   : > { %p4547_p0 = scmp.ne.s32.totalorder %s404_s14, %s4546_s22  ;;  %p4554_p6 = scmp.lt.s32.totalorder %s404_s14, %s404_s14 }
  0x8d   : > { %p4555_p8 = scmp.lt.s32.totalorder %s4553_s15, %s4546_s22 }
  0x8e   : > { %p4549_p1 = pnand %p4547_p0, %p4701_p7 }
  0x8f   : > { %p4556_p9 = por %p4555_p8, %p4554_p6 }
  0x90   : > { %p4550_p4 = pneg %p4549_p1 }
  0x92   : > { %p4557_p10 = pnand %p4556_p9, %p4550_p4 }
  0x94   : > { %4560 = shalt.err (!%p4557_p10)
}
  0x95   : > { %3959 = dma.hbm_to_vmem [thread:$0]  (!%p4687_p5), %s5566_s11, 16, %s404_s14, [#allocation11]  }
  0x96   : > { %p5583_p11 = scmp.ne.s32.totalorder %s5577_s26, 0 }
  0x97   : > { %p5584_p12 = scmp.ne.s32.totalorder (!%p5583_p11), %s5576_s25, 0 }
  0x98   : > { %425 = sbr.rel (%p5583_p11) target bundleno = 1692 (0x69c), region = 68 }
  0x9f   : > { %4566 = dma.done.wait (%p5584_p12), [#allocation3], 64  }
  0xa0   : > { %4568 = vsyncadd (%p5584_p12), [#allocation3], 4294967232 }
  0xa1   : > { %4570 = dma.done.wait (%p5584_p12), [#allocation5], 16384  }
  0xa2   : > { %4572 = vsyncadd (%p5584_p12), [#allocation5], 4294950912 }
  0xa3   : > { %4574 = dma.done.wait (%p5584_p12), [#allocation8], 2064  }
  0xa4   : > { %4576 = vsyncadd (%p5584_p12), [#allocation8], 4294965232 }
  0xa5   : > { %4578 = dma.done.wait (%p5584_p12), [#allocation11], 16  }
  0xa6   : > { %4580 = vsyncadd (%p5584_p12), [#allocation11], 4294967280  ;;  %s5585_s26 = sadd.s32 4294967295, %s4583_s21   ;;  %v4595_v0 = vmov 0   ;;  %v3991_v1 = vld [vmem:[%s5556_s1 + $0x4] ss:$16 sps:$4 sm:$0xff]  }
  0xa7   : > { %s3426_s29 = sshll.u32 %s5585_s26, 3  ;;  %619 = vmatprep.mubr.bf16.mxu0 %v4595_v0  ;;  %692 = vmatprep.mubr.bf16.mxu1 %v4595_v0  ;;  %v3993_v2 = vld [vmem:[%s5556_s1 + $0xc] ss:$16 sps:$4 sm:$0xff]   ;;  %v3995_v3 = vld [vmem:[%s5556_s1] ss:$16 sps:$4 sm:$0xff]   ;;  %vm574_vm0 = vcmask 130048  }
  0xa8   : > { %p488_p5 = scmp.lt.s32.totalorder %s3426_s29, 15  ;;  %587 = vmatprep.subr.bf16.mxu0 %v3991_v1  ;;  %v3996_v4 = vld [vmem:[%s5556_s1 + $0x8] ss:$16 sps:$4 sm:$0xff]   ;;  %660 = vmatprep.subr.bf16.mxu1 %v3993_v2  ;;  %v4001_v6 = vld [vmem:[#allocation4] ss:$8 sps:$4 sm:$0xff]   ;;  %s5586_s25 = sld [smem:[#allocation17_spill]] }
  0xa9   : > { %588 = vmatpush1.bf16.msra.mxu0 %v3995_v3  ;;  %661 = vmatpush1.bf16.msra.mxu1 %v3996_v4  ;;  %v4003_v7 = vld [vmem:[#allocation4 + $0x4] ss:$8 sps:$4 sm:$0xff]   ;;  %v4004_v8 = vld [vmem:[#allocation4 + $0x100] ss:$8 sps:$4 sm:$0xff]   ;;  %v4007_v10 = vld [vmem:[#allocation4 + $0x10] ss:$8 sps:$4 sm:$0xff]  }
  0xaa   : > { %s5588_s29 = smov (!%p488_p5, %s3426_s29), 15  ;;  %1165 = vmatprep.subr.bf16.mxu1 %v4003_v7  ;;  %v4006_v9 = vld [vmem:[#allocation4 + $0x104] ss:$8 sps:$4 sm:$0xff]   ;;  %v4009_v11 = vld [vmem:[#allocation4 + $0x14] ss:$8 sps:$4 sm:$0xff]  }
  0xab   : > { %s3427_s19 = sshll.u32 %s5588_s29, 2  ;;  %1238 = vmatprep.subr.bf16.mxu0 %v4006_v9  ;;  %v4012_v13 = vld [vmem:[#allocation4 + $0x114] ss:$8 sps:$4 sm:$0xff]   ;;  %v4010_v14 = vld [vmem:[#allocation4 + $0x110] ss:$8 sps:$4 sm:$0xff]  }
  0xac   : > { %s4857_s28 = scalar_lea.vmem %s5555_s0, %s3427_s19  ;;  %v4015_v15 = vld [vmem:[#allocation4 + $0x24] ss:$8 sps:$4 sm:$0xff]   ;;  %v4013_v16 = vld [vmem:[#allocation4 + $0x20] ss:$8 sps:$4 sm:$0xff]   ;;  %v4021_v18 = vld [vmem:[#allocation4 + $0x34] ss:$8 sps:$4 sm:$0xff]  }
  0xad   : > { %v3997_v5 = vld [vmem:[%s4857_s28] sm:$0xff]   ;;  %v3998_v12 = vld [vmem:[%s4857_s28 + $0x8] sm:$0xff]   ;;  %v4019_v20 = vld [vmem:[#allocation4 + $0x30] ss:$8 sps:$4 sm:$0xff]  }
  0xae   : > { %3438 = vmatmul.mubr.msk.bf16.vlgmr.msra.gmra.mrb[0].mxu0 %vm574_vm0, %v3997_v5  ;;  %3442 = vmatmul.mubr.msk.bf16.vlgmr.msra.gmra.mrb[0].mxu1 %vm574_vm0, %v3997_v5  ;;  %v4018_v17 = vld [vmem:[#allocation4 + $0x124] ss:$8 sps:$4 sm:$0xff]   ;;  %v4016_v19 = vld [vmem:[#allocation4 + $0x120] ss:$8 sps:$4 sm:$0xff]   ;;  %v4024_v21 = vld [vmem:[#allocation4 + $0x134] ss:$8 sps:$4 sm:$0xff]   ;;  %s497_s27 = scalar_lea.vmem %s5586_s25, %s3427_s19 }
  0xaf   : > { %702 = vmatprep.mubr.bf16.mxu1 %v4595_v0  ;;  %629 = vmatprep.mubr.bf16.mxu0 %v4595_v0  ;;  %v3999_v22 = vld [vmem:[%s4857_s28 + $0x10] sm:$0xff]   ;;  %v4025_v25 = vld [vmem:[#allocation4 + $0x40] ss:$8 sps:$4 sm:$0xff]   ;;  %v4033_v27 = vld [vmem:[#allocation4 + $0x54] ss:$8 sps:$4 sm:$0xff]  }
  0xb0   : > { %1166 = vmatpush1.bf16.msra.mxu1 %v4001_v6  ;;  %1239 = vmatpush1.bf16.msra.mxu0 %v4004_v8  ;;  %v4022_v23 = vld [vmem:[#allocation4 + $0x130] ss:$8 sps:$4 sm:$0xff]   ;;  %v4027_v24 = vld [vmem:[#allocation4 + $0x44] ss:$8 sps:$4 sm:$0xff]   ;;  %v4028_v28 = vld [vmem:[#allocation4 + $0x140] ss:$8 sps:$4 sm:$0xff]  }
  0xb1   : > { %1167 = vmatprep.subr.bf16.mxu1 %v4009_v11  ;;  %1240 = vmatprep.subr.bf16.mxu0 %v4012_v13  ;;  %v4030_v26 = vld [vmem:[#allocation4 + $0x144] ss:$8 sps:$4 sm:$0xff]   ;;  %v4031_v29 = vld [vmem:[#allocation4 + $0x50] ss:$8 sps:$4 sm:$0xff]   ;;  %v4036_v30 = vld [vmem:[#allocation4 + $0x154] ss:$8 sps:$4 sm:$0xff]   ;;  %v514_v11 = vlaneseq }
  0xb2   : > { %v4000_v31 = vld [vmem:[%s4857_s28 + $0x18] sm:$0xff]   ;;  %v4039_v32 = vld [vmem:[#allocation4 + $0x64] ss:$8 sps:$4 sm:$0xff]   ;;  %v4037_v34 = vld [vmem:[#allocation4 + $0x60] ss:$8 sps:$4 sm:$0xff]  }
  0xb3   : > { %v4034_v33 = vld [vmem:[#allocation4 + $0x150] ss:$8 sps:$4 sm:$0xff]   ;;  %v4042_v35 = vld [vmem:[#allocation4 + $0x164] ss:$8 sps:$4 sm:$0xff]   ;;  %v4045_v36 = vld [vmem:[#allocation4 + $0x74] ss:$8 sps:$4 sm:$0xff]  }
  0xb4   : > { %1168 = vmatpush1.bf16.msra.mxu1 %v4007_v10  ;;  %1241 = vmatpush1.bf16.msra.mxu0 %v4010_v14  ;;  %v4040_v37 = vld [vmem:[#allocation4 + $0x160] ss:$8 sps:$4 sm:$0xff]   ;;  %v4043_v38 = vld [vmem:[#allocation4 + $0x70] ss:$8 sps:$4 sm:$0xff]   ;;  %v4048_v39 = vld [vmem:[#allocation4 + $0x174] ss:$8 sps:$4 sm:$0xff]  }
  0xb5   : > { %1169 = vmatprep.subr.bf16.mxu1 %v4015_v15  ;;  %1242 = vmatprep.subr.bf16.mxu0 %v4018_v17  ;;  %v4051_v40 = vld [vmem:[#allocation4 + $0x84] ss:$8 sps:$4 sm:$0xff]   ;;  %v4046_v41 = vld [vmem:[#allocation4 + $0x170] ss:$8 sps:$4 sm:$0xff]   ;;  %v4049_v42 = vld [vmem:[#allocation4 + $0x80] ss:$8 sps:$4 sm:$0xff]  }
  0xb6   : > { %3443 = vmatmul.mubr.msk.bf16.gmra.mrb[4].mxu1 %vm574_vm0, %v3998_v12  ;;  %3439 = vmatmul.mubr.msk.bf16.gmra.mrb[4].mxu0 %vm574_vm0, %v3998_v12  ;;  %v4054_v43 = vld [vmem:[#allocation4 + $0x184] ss:$8 sps:$4 sm:$0xff]   ;;  %v4057_v44 = vld [vmem:[#allocation4 + $0x94] ss:$8 sps:$4 sm:$0xff]   ;;  %v4052_v45 = vld [vmem:[#allocation4 + $0x180] ss:$8 sps:$4 sm:$0xff]  }
  0xb7   : > { %712 = vmatprep.mubr.bf16.mxu1 %v4595_v0  ;;  %639 = vmatprep.mubr.bf16.mxu0 %v4595_v0  ;;  %v4055_v46 = vld [vmem:[#allocation4 + $0x90] ss:$8 sps:$4 sm:$0xff]   ;;  %v4060_v47 = vld [vmem:[#allocation4 + $0x194] ss:$8 sps:$4 sm:$0xff]   ;;  %v4063_v49 = vld [vmem:[#allocation4 + $0xa4] ss:$8 sps:$4 sm:$0xff]  }
  0xb8   : > { %1170 = vmatpush1.bf16.msra.mxu1 %v4013_v16  ;;  %1243 = vmatpush1.bf16.msra.mxu0 %v4016_v19  ;;  %v4058_v48 = vld [vmem:[#allocation4 + $0x190] ss:$8 sps:$4 sm:$0xff]   ;;  %v4061_v50 = vld [vmem:[#allocation4 + $0xa0] ss:$8 sps:$4 sm:$0xff]   ;;  %v4066_v51 = vld [vmem:[#allocation4 + $0x1a4] ss:$8 sps:$4 sm:$0xff]  }
  0xb9   : > { %1171 = vmatprep.subr.bf16.mxu1 %v4021_v18  ;;  %1244 = vmatprep.subr.bf16.mxu0 %v4024_v21  ;;  %v4069_v52 = vld [vmem:[#allocation4 + $0xb4] ss:$8 sps:$4 sm:$0xff]   ;;  %v4064_v53 = vld [vmem:[#allocation4 + $0x1a0] ss:$8 sps:$4 sm:$0xff]   ;;  %v4067_v54 = vld [vmem:[#allocation4 + $0xb0] ss:$8 sps:$4 sm:$0xff]  }
  0xba   : > { %v4072_v55 = vld [vmem:[#allocation4 + $0x1b4] ss:$8 sps:$4 sm:$0xff]   ;;  %v4075_v56 = vld [vmem:[#allocation4 + $0xc4] ss:$8 sps:$4 sm:$0xff]   ;;  %v4070_v57 = vld [vmem:[#allocation4 + $0x1b0] ss:$8 sps:$4 sm:$0xff]  }
  0xbb   : > { %v4073_v58 = vld [vmem:[#allocation4 + $0xc0] ss:$8 sps:$4 sm:$0xff]   ;;  %v4078_v59 = vld [vmem:[#allocation4 + $0x1c4] ss:$8 sps:$4 sm:$0xff]   ;;  %v4081_v60 = vld [vmem:[#allocation4 + $0xd4] ss:$8 sps:$4 sm:$0xff]  }
  0xbc   : > { %1172 = vmatpush1.bf16.msra.mxu1 %v4019_v20  ;;  %1245 = vmatpush1.bf16.msra.mxu0 %v4022_v23  ;;  %v4076_v61 = vld [vmem:[#allocation4 + $0x1c0] ss:$8 sps:$4 sm:$0xff]   ;;  %v4079_v62 = vld [vmem:[#allocation4 + $0xd0] ss:$8 sps:$4 sm:$0xff]   ;;  %v4084_v63 = vld [vmem:[#allocation4 + $0x1d4] ss:$8 sps:$4 sm:$0xff]  }
  0xbd   : > { %1173 = vmatprep.subr.bf16.mxu1 %v4027_v24  ;;  %1246 = vmatprep.subr.bf16.mxu0 %v4030_v26  ;;  %v4087_v1 = vld [vmem:[#allocation4 + $0xe4] ss:$8 sps:$4 sm:$0xff]   ;;  %v4085_v3 = vld [vmem:[#allocation4 + $0xe0] ss:$8 sps:$4 sm:$0xff]   ;;  %v4093_v5 = vld [vmem:[#allocation4 + $0xf4] ss:$8 sps:$4 sm:$0xff]  }
  0xbe   : > { %3444 = vmatmul.mubr.msk.bf16.gmra.mrb[8].mxu1 %vm574_vm0, %v3999_v22  ;;  %3440 = vmatmul.mubr.msk.bf16.gmra.mrb[8].mxu0 %vm574_vm0, %v3999_v22  ;;  %v4090_v2 = vld [vmem:[#allocation4 + $0x1e4] ss:$8 sps:$4 sm:$0xff]   ;;  %v4088_v4 = vld [vmem:[#allocation4 + $0x1e0] ss:$8 sps:$4 sm:$0xff]   ;;  %v4096_v6 = vld [vmem:[#allocation4 + $0x1f4] ss:$8 sps:$4 sm:$0xff]  }
  0xbf   : > { %722 = vmatprep.mubr.bf16.mxu1 %v4595_v0  ;;  %649 = vmatprep.mubr.bf16.mxu0 %v4595_v0  ;;  %v4082_v0 = vld [vmem:[#allocation4 + $0x1d0] ss:$8 sps:$4 sm:$0xff]   ;;  %v4099_v9 = vld [vmem:[#allocation6 + $0x4] ss:$8 sps:$4 sm:$0xff]   ;;  %v4102_v10 = vld [vmem:[%s5558_s3 + $0x4] ss:$8 sps:$4 sm:$0xff]  }
  0xc0   : > { %1174 = vmatpush1.bf16.msra.mxu1 %v4025_v25  ;;  %1247 = vmatpush1.bf16.msra.mxu0 %v4028_v28  ;;  %v4091_v7 = vld [vmem:[#allocation4 + $0xf0] ss:$8 sps:$4 sm:$0xff]   ;;  %v4889_v12 = vshrl.u32 %v514_v11, 7  ;;  %v512_v15 = vld [vmem:[#allocation2] sm:$0xf] }
  0xc1   : > { %1175 = vmatprep.subr.bf16.mxu1 %v4033_v27  ;;  %1248 = vmatprep.subr.bf16.mxu0 %v4036_v30  ;;  %v4094_v8 = vld [vmem:[#allocation4 + $0x1f0] ss:$8 sps:$4 sm:$0xff]  }
  0xc2   : > { %v516_v13 = vsub.s32 0, %v4889_v12  ;;  %v524_v14 = vsub.s32 2, %v4889_v12  ;;  %v520_v16 = vsub.s32 1, %v4889_v12  ;;  %v528_v17 = vsub.s32 3, %v4889_v12 }
  0xc4   : > { %1176 = vmatpush1.bf16.msra.mxu1 %v4031_v29  ;;  %1249 = vmatpush1.bf16.msra.mxu0 %v4034_v33  ;;  %v4897_v18 = vrot.slane %v512_v15, %v516_v13  ;;  %v4899_v19 = vrot.slane %v512_v15, %v524_v14  ;;  %v4903_v20 = vrot.slane %v512_v15, %v520_v16  ;;  %v4111_v14 = vld [vmem:[#allocation6 + $0x24] ss:$8 sps:$4 sm:$0xff]  }
  0xc5   : > { %1177 = vmatprep.subr.bf16.mxu1 %v4039_v32  ;;  %1250 = vmatprep.subr.bf16.mxu0 %v4042_v35  ;;  %v4905_v21 = vrot.slane %v512_v15, %v528_v17  ;;  %v4114_v15 = vld [vmem:[%s5558_s3 + $0x24] ss:$8 sps:$4 sm:$0xff]  }
  0xc6   : > { %3445 = vmatmul.mubr.msk.bf16.gmra.mrb[12].mxu1 %vm574_vm0, %v4000_v31  ;;  %3441 = vmatmul.mubr.msk.bf16.gmra.mrb[12].mxu0 %vm574_vm0, %v4000_v31 }
  0xc8   : > { %1178 = vmatpush1.bf16.msra.mxu1 %v4037_v34  ;;  %1251 = vmatpush1.bf16.msra.mxu0 %v4040_v37 }
  0xc9   : > { %1179 = vmatprep.subr.bf16.mxu1 %v4045_v36  ;;  %1252 = vmatprep.subr.bf16.mxu0 %v4048_v39 }
  0xcc   : > { %1180 = vmatpush1.bf16.msra.mxu1 %v4043_v38  ;;  %1253 = vmatpush1.bf16.msra.mxu0 %v4046_v41 }
  0xcd   : > { %1181 = vmatprep.subr.bf16.mxu1 %v4051_v40  ;;  %1254 = vmatprep.subr.bf16.mxu0 %v4054_v43 }
  0xd0   : > { %1182 = vmatpush1.bf16.msra.mxu1 %v4049_v42  ;;  %1255 = vmatpush1.bf16.msra.mxu0 %v4052_v45 }
  0xd1   : > { %1183 = vmatprep.subr.bf16.mxu1 %v4057_v44  ;;  %1256 = vmatprep.subr.bf16.mxu0 %v4060_v47 }
  0xd4   : > { %1184 = vmatpush1.bf16.msra.mxu1 %v4055_v46  ;;  %1257 = vmatpush1.bf16.msra.mxu0 %v4058_v48 }
  0xd5   : > { %1185 = vmatprep.subr.bf16.mxu1 %v4063_v49  ;;  %1258 = vmatprep.subr.bf16.mxu0 %v4066_v51  ;;  %v4100_v51 = vld [vmem:[%s5558_s3] ss:$8 sps:$4 sm:$0xff]  }
  0xd8   : > { %1186 = vmatpush1.bf16.msra.mxu1 %v4061_v50  ;;  %1259 = vmatpush1.bf16.msra.mxu0 %v4064_v53  ;;  %v4097_v50 = vld [vmem:[#allocation6] ss:$8 sps:$4 sm:$0xff]  }
  0xd9   : > { %1187 = vmatprep.subr.bf16.mxu1 %v4069_v52  ;;  %1260 = vmatprep.subr.bf16.mxu0 %v4072_v55  ;;  %v4108_v55 = vld [vmem:[%s5558_s3 + $0x14] ss:$8 sps:$4 sm:$0xff]  }
  0xdc   : > { %1188 = vmatpush1.bf16.msra.mxu1 %v4067_v54  ;;  %1261 = vmatpush1.bf16.msra.mxu0 %v4070_v57  ;;  %v4105_v54 = vld [vmem:[#allocation6 + $0x14] ss:$8 sps:$4 sm:$0xff]  }
  0xdd   : > { %1189 = vmatprep.subr.bf16.mxu1 %v4075_v56  ;;  %1262 = vmatprep.subr.bf16.mxu0 %v4078_v59 }
  0xe0   : > { %1190 = vmatpush1.bf16.msra.mxu1 %v4073_v58  ;;  %1263 = vmatpush1.bf16.msra.mxu0 %v4076_v61 }
  0xe1   : > { %1191 = vmatprep.subr.bf16.mxu1 %v4081_v60  ;;  %1264 = vmatprep.subr.bf16.mxu0 %v4084_v63 }
  0xe4   : > { %1192 = vmatpush1.bf16.msra.mxu1 %v4079_v62  ;;  %1265 = vmatpush1.bf16.msra.mxu0 %v4082_v0 }
  0xe5   : > { %1193 = vmatprep.subr.bf16.mxu1 %v4087_v1  ;;  %1266 = vmatprep.subr.bf16.mxu0 %v4090_v2 }
  0xe8   : > { %1194 = vmatpush1.bf16.msra.mxu1 %v4085_v3  ;;  %1267 = vmatpush1.bf16.msra.mxu0 %v4088_v4 }
  0xe9   : > { %1195 = vmatprep.subr.bf16.mxu1 %v4093_v5  ;;  %1268 = vmatprep.subr.bf16.mxu0 %v4096_v6  ;;  %v4103_v6 = vld [vmem:[#allocation6 + $0x10] ss:$8 sps:$4 sm:$0xff]  }
  0xec   : > { %1196 = vmatpush1.bf16.msra.mxu1 %v4091_v7  ;;  %1269 = vmatpush1.bf16.msra.mxu0 %v4094_v8  ;;  %v4106_v7 = vld [vmem:[%s5558_s3 + $0x10] ss:$8 sps:$4 sm:$0xff]  }
  0xed   : > { %1695 = vmatprep.subr.bf16.mxu1 %v4099_v9  ;;  %2237 = vmatprep.subr.bf16.mxu0 %v4102_v10 }
 0x181   : > { %v621_v22 = vpop.f32.mrb[0].mxu0  ;;  %v694_v23 = vpop.f32.mrb[0].mxu1 }
 0x182   : > { %v622_v24 = vadd.f32 %v621_v22, %v4897_v18  ;;  %v695_v25 = vadd.f32 %v694_v23, %v4899_v19  ;;  %v623_v26 = vpop.f32.mrb[1].mxu0  ;;  %v696_v27 = vpop.f32.mrb[1].mxu1 }
 0x183   : > { %v624_v28 = vadd.f32 %v623_v26, %v4903_v20  ;;  %v697_v29 = vadd.f32 %v696_v27, %v4905_v21  ;;  %v625_v30 = vpop.f32.mrb[2].mxu0  ;;  %v698_v31 = vpop.f32.mrb[2].mxu1  ;;  %v4109_v27 = vld [vmem:[#allocation6 + $0x20] ss:$8 sps:$4 sm:$0xff]  }
 0x184   : > { %v733_v32 = vmax.f32 %v622_v24, 0.0  ;;  %v626_v33 = vadd.f32 %v625_v30, %v4897_v18  ;;  %v699_v34 = vadd.f32 %v698_v31, %v4899_v19  ;;  %v627_v35 = vpop.f32.mrb[3].mxu0  ;;  %v700_v36 = vpop.f32.mrb[3].mxu1  ;;  %v735_v40 = vmax.f32 %v695_v25, 0.0 }
 0x185   : > { %v734_v37 = vmax.f32 %v624_v28, 0.0  ;;  %v628_v38 = vadd.f32 %v627_v35, %v4903_v20  ;;  %v701_v39 = vadd.f32 %v700_v36, %v4905_v21  ;;  %v736_v43 = vmax.f32 %v697_v29, 0.0  ;;  %v4112_v28 = vld [vmem:[%s5558_s3 + $0x20] ss:$8 sps:$4 sm:$0xff]  }
 0x186   : > { %v737_v41 = vmax.f32 %v626_v33, 0.0  ;;  %v739_v42 = vmax.f32 %v699_v34, 0.0  ;;  %v4117_v33 = vld [vmem:[#allocation6 + $0x34] ss:$8 sps:$4 sm:$0xff]   ;;  %v4120_v34 = vld [vmem:[%s5558_s3 + $0x34] ss:$8 sps:$4 sm:$0xff]  }
 0x187   : > { %v738_v44 = vmax.f32 %v628_v38, 0.0  ;;  %v740_v45 = vmax.f32 %v701_v39, 0.0 }
 0x188   : > { %v4915_v46 = vpack.c.bf16 %v737_v41, %v733_v32  ;;  %v4917_v47 = vpack.c.bf16 %v739_v42, %v735_v40 }
 0x189   : > { %v4919_v48 = vpack.c.bf16 %v738_v44, %v734_v37  ;;  %v4921_v49 = vpack.c.bf16 %v740_v45, %v736_v43  ;;  %v704_v52 = vpop.f32.mrb[4].mxu1  ;;  %v631_v53 = vpop.f32.mrb[4].mxu0 }
 0x18a   : > { %v705_v56 = vadd.f32 %v704_v52, %v4899_v19  ;;  %v706_v57 = vpop.f32.mrb[5].mxu1  ;;  %v632_v58 = vadd.f32 %v631_v53, %v4897_v18  ;;  %v633_v59 = vpop.f32.mrb[5].mxu0  ;;  %v4115_v53 = vld [vmem:[#allocation6 + $0x30] ss:$8 sps:$4 sm:$0xff]  }
 0x18b   : > { %1197 = vmatprep.mubr.bf16.mxu1 %v4919_v48  ;;  %1270 = vmatprep.mubr.bf16.mxu0 %v4921_v49  ;;  %v707_v60 = vadd.f32 %v706_v57, %v4905_v21  ;;  %v708_v61 = vpop.f32.mrb[6].mxu1  ;;  %v634_v62 = vadd.f32 %v633_v59, %v4903_v20  ;;  %v635_v63 = vpop.f32.mrb[6].mxu0  ;;  %v4123_v59 = vld [vmem:[#allocation6 + $0x44] ss:$8 sps:$4 sm:$0xff]  }
 0x18c   : > { %1198 = vmatmul.mubr.bf16.vlgmr.msra.gmra.mrb[16].mxu1 %v4915_v46  ;;  %1271 = vmatmul.mubr.bf16.vlgmr.msra.gmra.mrb[16].mxu0 %v4917_v47  ;;  %v743_v0 = vmax.f32 %v705_v56, 0.0  ;;  %v709_v1 = vadd.f32 %v708_v61, %v4899_v19  ;;  %v741_v2 = vmax.f32 %v632_v58, 0.0  ;;  %v710_v3 = vpop.f32.mrb[7].mxu1  ;;  %v636_v4 = vadd.f32 %v635_v63, %v4897_v18  ;;  %v637_v5 = vpop.f32.mrb[7].mxu0 }
 0x18d   : > { %1696 = vmatpush1.bf16.msra.mxu1 %v4097_v50  ;;  %2238 = vmatpush1.bf16.msra.mxu0 %v4100_v51  ;;  %v744_v8 = vmax.f32 %v707_v60, 0.0  ;;  %v711_v9 = vadd.f32 %v710_v3, %v4905_v21  ;;  %v742_v10 = vmax.f32 %v634_v62, 0.0  ;;  %v638_v11 = vadd.f32 %v637_v5, %v4903_v20  ;;  %v4126_v60 = vld [vmem:[%s5558_s3 + $0x44] ss:$8 sps:$4 sm:$0xff]  }
 0x18e   : > { %1697 = vmatprep.subr.bf16.mxu1 %v4105_v54  ;;  %2239 = vmatprep.subr.bf16.mxu0 %v4108_v55  ;;  %v747_v17 = vmax.f32 %v709_v1, 0.0  ;;  %v745_v22 = vmax.f32 %v636_v4, 0.0  ;;  %v4118_v54 = vld [vmem:[%s5558_s3 + $0x30] ss:$8 sps:$4 sm:$0xff]   ;;  %v4121_v3 = vld [vmem:[#allocation6 + $0x40] ss:$8 sps:$4 sm:$0xff]  }
 0x18f   : > { %v748_v23 = vmax.f32 %v711_v9, 0.0  ;;  %v746_v24 = vmax.f32 %v638_v11, 0.0  ;;  %v4124_v4 = vld [vmem:[%s5558_s3 + $0x40] ss:$8 sps:$4 sm:$0xff]  }
 0x190   : > { %v4947_v25 = vpack.c.bf16 %v747_v17, %v743_v0  ;;  %v4949_v26 = vpack.c.bf16 %v745_v22, %v741_v2  ;;  %v4129_v9 = vld [vmem:[#allocation6 + $0x54] ss:$8 sps:$4 sm:$0xff]  }
 0x191   : > { %1698 = vmatpush1.bf16.msra.mxu1 %v4103_v6  ;;  %2240 = vmatpush1.bf16.msra.mxu0 %v4106_v7  ;;  %v4954_v29 = vpack.c.bf16 %v748_v23, %v744_v8  ;;  %v4956_v30 = vpack.c.bf16 %v746_v24, %v742_v10  ;;  %v714_v31 = vpop.f32.mrb[8].mxu1  ;;  %v641_v32 = vpop.f32.mrb[8].mxu0  ;;  %v4132_v10 = vld [vmem:[%s5558_s3 + $0x54] ss:$8 sps:$4 sm:$0xff]  }
 0x192   : > { %1699 = vmatprep.subr.bf16.mxu1 %v4111_v14  ;;  %2241 = vmatprep.subr.bf16.mxu0 %v4114_v15  ;;  %v715_v35 = vadd.f32 %v714_v31, %v4899_v19  ;;  %v716_v36 = vpop.f32.mrb[9].mxu1  ;;  %v642_v37 = vadd.f32 %v641_v32, %v4897_v18  ;;  %v643_v38 = vpop.f32.mrb[9].mxu0 }
 0x193   : > { %v717_v39 = vadd.f32 %v716_v36, %v4905_v21  ;;  %v718_v40 = vpop.f32.mrb[10].mxu1  ;;  %1280 = vmatprep.mubr.bf16.mxu0 %v4954_v29  ;;  %v644_v41 = vadd.f32 %v643_v38, %v4903_v20  ;;  %v645_v42 = vpop.f32.mrb[10].mxu0  ;;  %1207 = vmatprep.mubr.bf16.mxu1 %v4956_v30  ;;  %v4127_v36 = vld [vmem:[#allocation6 + $0x50] ss:$8 sps:$4 sm:$0xff]  }
 0x194   : > { %v751_v43 = vmax.f32 %v715_v35, 0.0  ;;  %v719_v44 = vadd.f32 %v718_v40, %v4899_v19  ;;  %v749_v45 = vmax.f32 %v642_v37, 0.0  ;;  %v720_v50 = vpop.f32.mrb[11].mxu1  ;;  %1281 = vmatmul.mubr.bf16.gmra.mrb[20].mxu0 %v4947_v25  ;;  %v646_v51 = vadd.f32 %v645_v42, %v4897_v18  ;;  %v647_v52 = vpop.f32.mrb[11].mxu0  ;;  %1208 = vmatmul.mubr.bf16.gmra.mrb[20].mxu1 %v4949_v26  ;;  %v4130_v37 = vld [vmem:[%s5558_s3 + $0x50] ss:$8 sps:$4 sm:$0xff]  }
 0x195   : > { %1700 = vmatpush1.bf16.msra.mxu1 %v4109_v27  ;;  %2242 = vmatpush1.bf16.msra.mxu0 %v4112_v28  ;;  %v752_v55 = vmax.f32 %v717_v39, 0.0  ;;  %v721_v56 = vadd.f32 %v720_v50, %v4905_v21  ;;  %v750_v57 = vmax.f32 %v644_v41, 0.0  ;;  %v648_v58 = vadd.f32 %v647_v52, %v4903_v20  ;;  %v4135_v41 = vld [vmem:[#allocation6 + $0x64] ss:$8 sps:$4 sm:$0xff]  }
 0x196   : > { %1701 = vmatprep.subr.bf16.mxu1 %v4117_v33  ;;  %2243 = vmatprep.subr.bf16.mxu0 %v4120_v34  ;;  %v755_v61 = vmax.f32 %v719_v44, 0.0  ;;  %v753_v62 = vmax.f32 %v646_v51, 0.0 }
 0x197   : > { %v756_v63 = vmax.f32 %v721_v56, 0.0  ;;  %v754_v0 = vmax.f32 %v648_v58, 0.0  ;;  %v4139_v56 = vld [vmem:[#allocation6 + $0x70] ss:$8 sps:$4 sm:$0xff]   ;;  %v4147_v58 = vld [vmem:[#allocation6 + $0x84] ss:$8 sps:$4 sm:$0xff]  }
 0x198   : > { %v4979_v1 = vpack.c.bf16 %v755_v61, %v751_v43  ;;  %v4981_v2 = vpack.c.bf16 %v753_v62, %v749_v45  ;;  %v4148_v61 = vld [vmem:[%s5558_s3 + $0x80] ss:$8 sps:$4 sm:$0xff]  }
 0x199   : > { %1702 = vmatpush1.bf16.msra.mxu1 %v4115_v53  ;;  %2244 = vmatpush1.bf16.msra.mxu0 %v4118_v54  ;;  %v4986_v5 = vpack.c.bf16 %v756_v63, %v752_v55  ;;  %v4988_v6 = vpack.c.bf16 %v754_v0, %v750_v57  ;;  %v724_v7 = vpop.f32.mrb[12].mxu1  ;;  %v651_v8 = vpop.f32.mrb[12].mxu0  ;;  %v4141_v54 = vld [vmem:[#allocation6 + $0x74] ss:$8 sps:$4 sm:$0xff]   ;;  %v4144_v55 = vld [vmem:[%s5558_s3 + $0x74] ss:$8 sps:$4 sm:$0xff]  }
 0x19a   : > { %1703 = vmatprep.subr.bf16.mxu1 %v4123_v59  ;;  %2245 = vmatprep.subr.bf16.mxu0 %v4126_v60  ;;  %v725_v11 = vadd.f32 %v724_v7, %v4899_v19  ;;  %v726_v14 = vpop.f32.mrb[13].mxu1  ;;  %v652_v15 = vadd.f32 %v651_v8, %v4897_v18  ;;  %v653_v17 = vpop.f32.mrb[13].mxu0  ;;  %v4142_v57 = vld [vmem:[%s5558_s3 + $0x70] ss:$8 sps:$4 sm:$0xff]   ;;  %v4150_v59 = vld [vmem:[%s5558_s3 + $0x84] ss:$8 sps:$4 sm:$0xff]  }
 0x19b   : > { %v727_v22 = vadd.f32 %v726_v14, %v4905_v21  ;;  %v728_v23 = vpop.f32.mrb[14].mxu1  ;;  %1290 = vmatprep.mubr.bf16.mxu0 %v4986_v5  ;;  %v654_v24 = vadd.f32 %v653_v17, %v4903_v20  ;;  %v655_v27 = vpop.f32.mrb[14].mxu0  ;;  %1217 = vmatprep.mubr.bf16.mxu1 %v4988_v6  ;;  %v4145_v60 = vld [vmem:[#allocation6 + $0x80] ss:$8 sps:$4 sm:$0xff]   ;;  %v4153_v62 = vld [vmem:[#allocation6 + $0x94] ss:$8 sps:$4 sm:$0xff]  }
 0x19c   : > { %v759_v28 = vmax.f32 %v725_v11, 0.0  ;;  %v729_v31 = vadd.f32 %v728_v23, %v4899_v19  ;;  %v757_v32 = vmax.f32 %v652_v15, 0.0  ;;  %v730_v33 = vpop.f32.mrb[15].mxu1  ;;  %1291 = vmatmul.mubr.bf16.gmra.mrb[24].mxu0 %v4979_v1  ;;  %v656_v34 = vadd.f32 %v655_v27, %v4897_v18  ;;  %v657_v35 = vpop.f32.mrb[15].mxu0  ;;  %1218 = vmatmul.mubr.bf16.gmra.mrb[24].mxu1 %v4981_v2  ;;  %v4138_v18 = vld [vmem:[%s5558_s3 + $0x64] ss:$8 sps:$4 sm:$0xff]  }
 0x19d   : > { %1704 = vmatpush1.bf16.msra.mxu1 %v4121_v3  ;;  %2246 = vmatpush1.bf16.msra.mxu0 %v4124_v4  ;;  %v760_v38 = vmax.f32 %v727_v22, 0.0  ;;  %v731_v39 = vadd.f32 %v730_v33, %v4905_v21  ;;  %v758_v19 = vmax.f32 %v654_v24, 0.0  ;;  %v658_v40 = vadd.f32 %v657_v35, %v4903_v20  ;;  %v4133_v21 = vld [vmem:[#allocation6 + $0x60] ss:$8 sps:$4 sm:$0xff]   ;;  %v4136_v20 = vld [vmem:[%s5558_s3 + $0x60] ss:$8 sps:$4 sm:$0xff]  }
 0x19e   : > { %1705 = vmatprep.subr.bf16.mxu1 %v4129_v9  ;;  %2247 = vmatprep.subr.bf16.mxu0 %v4132_v10  ;;  %v763_v42 = vmax.f32 %v729_v31, 0.0  ;;  %v761_v43 = vmax.f32 %v656_v34, 0.0  ;;  %v4156_v63 = vld [vmem:[%s5558_s3 + $0x94] ss:$8 sps:$4 sm:$0xff]   ;;  %v4159_v3 = vld [vmem:[#allocation6 + $0xa4] ss:$8 sps:$4 sm:$0xff]  }
 0x19f   : > { %v764_v44 = vmax.f32 %v731_v39, 0.0  ;;  %v762_v45 = vmax.f32 %v658_v40, 0.0  ;;  %v4151_v0 = vld [vmem:[#allocation6 + $0x90] ss:$8 sps:$4 sm:$0xff]   ;;  %v4162_v4 = vld [vmem:[%s5558_s3 + $0xa4] ss:$8 sps:$4 sm:$0xff]  }
 0x1a0   : > { %v5011_v50 = vpack.c.bf16 %v763_v42, %v759_v28  ;;  %v5013_v51 = vpack.c.bf16 %v761_v43, %v757_v32  ;;  %v4157_v7 = vld [vmem:[#allocation6 + $0xa0] ss:$8 sps:$4 sm:$0xff]   ;;  %v4160_v8 = vld [vmem:[%s5558_s3 + $0xa0] ss:$8 sps:$4 sm:$0xff]   ;;  %v4168_v10 = vld [vmem:[%s5558_s3 + $0xb4] ss:$8 sps:$4 sm:$0xff]  }
 0x1a1   : > { %1706 = vmatpush1.bf16.msra.mxu1 %v4127_v36  ;;  %2248 = vmatpush1.bf16.msra.mxu0 %v4130_v37  ;;  %v5018_v52 = vpack.c.bf16 %v764_v44, %v760_v38  ;;  %v5020_v53 = vpack.c.bf16 %v762_v45, %v758_v19  ;;  %v4165_v9 = vld [vmem:[#allocation6 + $0xb4] ss:$8 sps:$4 sm:$0xff]   ;;  %v4163_v11 = vld [vmem:[#allocation6 + $0xb0] ss:$8 sps:$4 sm:$0xff]   ;;  %v4171_v15 = vld [vmem:[#allocation6 + $0xc4] ss:$8 sps:$4 sm:$0xff]  }
 0x1a2   : > { %1707 = vmatprep.subr.bf16.mxu1 %v4135_v41  ;;  %2249 = vmatprep.subr.bf16.mxu0 %v4138_v18  ;;  %v4166_v14 = vld [vmem:[%s5558_s3 + $0xb0] ss:$8 sps:$4 sm:$0xff]   ;;  %v4174_v17 = vld [vmem:[%s5558_s3 + $0xc4] ss:$8 sps:$4 sm:$0xff]   ;;  %v4172_v23 = vld [vmem:[%s5558_s3 + $0xc0] ss:$8 sps:$4 sm:$0xff]  }
 0x1a3   : > { %1300 = vmatprep.mubr.bf16.mxu0 %v5018_v52  ;;  %1227 = vmatprep.mubr.bf16.mxu1 %v5020_v53  ;;  %v4169_v22 = vld [vmem:[#allocation6 + $0xc0] ss:$8 sps:$4 sm:$0xff]   ;;  %v4177_v24 = vld [vmem:[#allocation6 + $0xd4] ss:$8 sps:$4 sm:$0xff]   ;;  %v4180_v27 = vld [vmem:[%s5558_s3 + $0xd4] ss:$8 sps:$4 sm:$0xff]  }
 0x1a4   : > { %1301 = vmatmul.mubr.bf16.gmra.mrb[28].mxu0 %v5011_v50  ;;  %1228 = vmatmul.mubr.bf16.gmra.mrb[28].mxu1 %v5013_v51  ;;  %v4175_v28 = vld [vmem:[#allocation6 + $0xd0] ss:$8 sps:$4 sm:$0xff]   ;;  %v4178_v31 = vld [vmem:[%s5558_s3 + $0xd0] ss:$8 sps:$4 sm:$0xff]   ;;  %v4186_v33 = vld [vmem:[%s5558_s3 + $0xe4] ss:$8 sps:$4 sm:$0xff]  }
 0x1a5   : > { %1708 = vmatpush1.bf16.msra.mxu1 %v4133_v21  ;;  %2250 = vmatpush1.bf16.msra.mxu0 %v4136_v20  ;;  %v4183_v32 = vld [vmem:[#allocation6 + $0xe4] ss:$8 sps:$4 sm:$0xff]   ;;  %v4181_v34 = vld [vmem:[#allocation6 + $0xe0] ss:$8 sps:$4 sm:$0xff]   ;;  %v4189_v36 = vld [vmem:[#allocation6 + $0xf4] ss:$8 sps:$4 sm:$0xff]  }
 0x1a6   : > { %1709 = vmatprep.subr.bf16.mxu1 %v4141_v54  ;;  %2251 = vmatprep.subr.bf16.mxu0 %v4144_v55  ;;  %v4184_v35 = vld [vmem:[%s5558_s3 + $0xe0] ss:$8 sps:$4 sm:$0xff]   ;;  %v4192_v37 = vld [vmem:[%s5558_s3 + $0xf4] ss:$8 sps:$4 sm:$0xff]   ;;  %v4190_v39 = vld [vmem:[%s5558_s3 + $0xf0] ss:$8 sps:$4 sm:$0xff]  }
 0x1a7   : > { %1727 = vmatprep.mubr.bf16.mxu1 %v4919_v48  ;;  %2269 = vmatprep.mubr.bf16.mxu0 %v4919_v48  ;;  %v4154_v48 = vld [vmem:[%s5558_s3 + $0x90] ss:$8 sps:$4 sm:$0xff]   ;;  %v4187_v38 = vld [vmem:[#allocation6 + $0xf0] ss:$8 sps:$4 sm:$0xff]   ;;  %v4198_v40 = vld [vmem:[%s5558_s3 + $0x104] ss:$8 sps:$4 sm:$0xff]  }
 0x1a8   : > { %v4195_v19 = vld [vmem:[#allocation6 + $0x104] ss:$8 sps:$4 sm:$0xff]   ;;  %v4193_v41 = vld [vmem:[#allocation6 + $0x100] ss:$8 sps:$4 sm:$0xff]   ;;  %v4201_v42 = vld [vmem:[#allocation6 + $0x114] ss:$8 sps:$4 sm:$0xff]  }
 0x1a9   : > { %1710 = vmatpush1.bf16.msra.mxu1 %v4139_v56  ;;  %2252 = vmatpush1.bf16.msra.mxu0 %v4142_v57  ;;  %v4196_v18 = vld [vmem:[%s5558_s3 + $0x100] ss:$8 sps:$4 sm:$0xff]   ;;  %v4204_v43 = vld [vmem:[%s5558_s3 + $0x114] ss:$8 sps:$4 sm:$0xff]   ;;  %v4202_v45 = vld [vmem:[%s5558_s3 + $0x110] ss:$8 sps:$4 sm:$0xff]  }
 0x1aa   : > { %1711 = vmatprep.subr.bf16.mxu1 %v4147_v58  ;;  %2253 = vmatprep.subr.bf16.mxu0 %v4150_v59  ;;  %v4199_v44 = vld [vmem:[#allocation6 + $0x110] ss:$8 sps:$4 sm:$0xff]   ;;  %v4207_v21 = vld [vmem:[#allocation6 + $0x124] ss:$8 sps:$4 sm:$0xff]   ;;  %v4210_v20 = vld [vmem:[%s5558_s3 + $0x124] ss:$8 sps:$4 sm:$0xff]  }
 0x1ab   : > { %v4208_v54 = vld [vmem:[%s5558_s3 + $0x120] ss:$8 sps:$4 sm:$0xff]   ;;  %v4216_v56 = vld [vmem:[%s5558_s3 + $0x134] ss:$8 sps:$4 sm:$0xff]   ;;  %v4214_v57 = vld [vmem:[%s5558_s3 + $0x130] ss:$8 sps:$4 sm:$0xff]  }
 0x1ac   : > { %v4213_v55 = vld [vmem:[#allocation6 + $0x134] ss:$8 sps:$4 sm:$0xff]   ;;  %v4219_v58 = vld [vmem:[#allocation6 + $0x144] ss:$8 sps:$4 sm:$0xff]   ;;  %v4222_v59 = vld [vmem:[%s5558_s3 + $0x144] ss:$8 sps:$4 sm:$0xff]  }
 0x1ad   : > { %1712 = vmatpush1.bf16.msra.mxu1 %v4145_v60  ;;  %2254 = vmatpush1.bf16.msra.mxu0 %v4148_v61  ;;  %v4220_v60 = vld [vmem:[%s5558_s3 + $0x140] ss:$8 sps:$4 sm:$0xff]  }
 0x1ae   : > { %1713 = vmatprep.subr.bf16.mxu1 %v4153_v62  ;;  %2255 = vmatprep.subr.bf16.mxu0 %v4156_v63  ;;  %v4225_v61 = vld [vmem:[#allocation6 + $0x154] ss:$8 sps:$4 sm:$0xff]   ;;  %v4228_v62 = vld [vmem:[%s5558_s3 + $0x154] ss:$8 sps:$4 sm:$0xff]  }
 0x1af   : > { %v4226_v63 = vld [vmem:[%s5558_s3 + $0x150] ss:$8 sps:$4 sm:$0xff]  }
 0x1b1   : > { %1714 = vmatpush1.bf16.msra.mxu1 %v4151_v0  ;;  %2256 = vmatpush1.bf16.msra.mxu0 %v4154_v48  ;;  %v4231_v0 = vld [vmem:[#allocation6 + $0x164] ss:$8 sps:$4 sm:$0xff]   ;;  %v4234_v48 = vld [vmem:[%s5558_s3 + $0x164] ss:$8 sps:$4 sm:$0xff]  }
 0x1b2   : > { %1715 = vmatprep.subr.bf16.mxu1 %v4159_v3  ;;  %2257 = vmatprep.subr.bf16.mxu0 %v4162_v4  ;;  %v4232_v3 = vld [vmem:[%s5558_s3 + $0x160] ss:$8 sps:$4 sm:$0xff]  }
 0x1b3   : > { %v4237_v4 = vld [vmem:[#allocation6 + $0x174] ss:$8 sps:$4 sm:$0xff]  }
 0x1b5   : > { %1716 = vmatpush1.bf16.msra.mxu1 %v4157_v7  ;;  %2258 = vmatpush1.bf16.msra.mxu0 %v4160_v8  ;;  %v4240_v7 = vld [vmem:[%s5558_s3 + $0x174] ss:$8 sps:$4 sm:$0xff]   ;;  %v4238_v8 = vld [vmem:[%s5558_s3 + $0x170] ss:$8 sps:$4 sm:$0xff]  }
 0x1b6   : > { %1717 = vmatprep.subr.bf16.mxu1 %v4165_v9  ;;  %2259 = vmatprep.subr.bf16.mxu0 %v4168_v10  ;;  %v4243_v9 = vld [vmem:[#allocation6 + $0x184] ss:$8 sps:$4 sm:$0xff]   ;;  %v4246_v10 = vld [vmem:[%s5558_s3 + $0x184] ss:$8 sps:$4 sm:$0xff]  }
 0x1b9   : > { %1718 = vmatpush1.bf16.msra.mxu1 %v4163_v11  ;;  %2260 = vmatpush1.bf16.msra.mxu0 %v4166_v14  ;;  %v4244_v11 = vld [vmem:[%s5558_s3 + $0x180] ss:$8 sps:$4 sm:$0xff]   ;;  %v4252_v14 = vld [vmem:[%s5558_s3 + $0x194] ss:$8 sps:$4 sm:$0xff]  }
 0x1ba   : > { %1719 = vmatprep.subr.bf16.mxu1 %v4171_v15  ;;  %2261 = vmatprep.subr.bf16.mxu0 %v4174_v17  ;;  %v4247_v15 = vld [vmem:[#allocation6 + $0x190] ss:$8 sps:$4 sm:$0xff]   ;;  %v4250_v17 = vld [vmem:[%s5558_s3 + $0x190] ss:$8 sps:$4 sm:$0xff]  }
 0x1bd   : > { %1720 = vmatpush1.bf16.msra.mxu1 %v4169_v22  ;;  %2262 = vmatpush1.bf16.msra.mxu0 %v4172_v23  ;;  %v4255_v22 = vld [vmem:[#allocation6 + $0x1a4] ss:$8 sps:$4 sm:$0xff]   ;;  %v4258_v23 = vld [vmem:[%s5558_s3 + $0x1a4] ss:$8 sps:$4 sm:$0xff]  }
 0x1be   : > { %1721 = vmatprep.subr.bf16.mxu1 %v4177_v24  ;;  %2263 = vmatprep.subr.bf16.mxu0 %v4180_v27  ;;  %v4253_v24 = vld [vmem:[#allocation6 + $0x1a0] ss:$8 sps:$4 sm:$0xff]   ;;  %v4256_v27 = vld [vmem:[%s5558_s3 + $0x1a0] ss:$8 sps:$4 sm:$0xff]  }
 0x1c1   : > { %1722 = vmatpush1.bf16.msra.mxu1 %v4175_v28  ;;  %2264 = vmatpush1.bf16.msra.mxu0 %v4178_v31  ;;  %v4261_v28 = vld [vmem:[#allocation6 + $0x1b4] ss:$8 sps:$4 sm:$0xff]   ;;  %v4264_v31 = vld [vmem:[%s5558_s3 + $0x1b4] ss:$8 sps:$4 sm:$0xff]  }
 0x1c2   : > { %1723 = vmatprep.subr.bf16.mxu1 %v4183_v32  ;;  %2265 = vmatprep.subr.bf16.mxu0 %v4186_v33  ;;  %v4259_v32 = vld [vmem:[#allocation6 + $0x1b0] ss:$8 sps:$4 sm:$0xff]   ;;  %v4262_v33 = vld [vmem:[%s5558_s3 + $0x1b0] ss:$8 sps:$4 sm:$0xff]  }
 0x1c5   : > { %1724 = vmatpush1.bf16.msra.mxu1 %v4181_v34  ;;  %2266 = vmatpush1.bf16.msra.mxu0 %v4184_v35  ;;  %v4267_v34 = vld [vmem:[#allocation6 + $0x1c4] ss:$8 sps:$4 sm:$0xff]   ;;  %v4270_v35 = vld [vmem:[%s5558_s3 + $0x1c4] ss:$8 sps:$4 sm:$0xff]  }
 0x1c6   : > { %1725 = vmatprep.subr.bf16.mxu1 %v4189_v36  ;;  %2267 = vmatprep.subr.bf16.mxu0 %v4192_v37  ;;  %v4265_v36 = vld [vmem:[#allocation6 + $0x1c0] ss:$8 sps:$4 sm:$0xff]   ;;  %v4268_v37 = vld [vmem:[%s5558_s3 + $0x1c0] ss:$8 sps:$4 sm:$0xff]  }
 0x1c9   : > { %1726 = vmatpush1.bf16.msra.mxu1 %v4187_v38  ;;  %2268 = vmatpush1.bf16.msra.mxu0 %v4190_v39  ;;  %v4273_v38 = vld [vmem:[#allocation6 + $0x1d4] ss:$8 sps:$4 sm:$0xff]   ;;  %v4276_v39 = vld [vmem:[%s5558_s3 + $0x1d4] ss:$8 sps:$4 sm:$0xff]  }
 0x1ca   : > { %1768 = vmatprep.subr.bf16.mxu1 %v4195_v19  ;;  %2310 = vmatprep.subr.bf16.mxu0 %v4198_v40  ;;  %v4271_v19 = vld [vmem:[#allocation6 + $0x1d0] ss:$8 sps:$4 sm:$0xff]   ;;  %v4274_v40 = vld [vmem:[%s5558_s3 + $0x1d0] ss:$8 sps:$4 sm:$0xff]  }
 0x1cc   : > { %1728 = vmatmul.mubr.bf16.vlgmr.msra.gmra.mrb[32].mxu1 %v4915_v46  ;;  %2270 = vmatmul.mubr.bf16.vlgmr.msra.gmra.mrb[32].mxu0 %v4915_v46  ;;  %v4205_v46 = vld [vmem:[#allocation6 + $0x120] ss:$8 sps:$4 sm:$0xff]  }
 0x1cd   : > { %1769 = vmatpush1.bf16.msra.mxu1 %v4193_v41  ;;  %2311 = vmatpush1.bf16.msra.mxu0 %v4196_v18  ;;  %v4279_v41 = vld [vmem:[#allocation6 + $0x1e4] ss:$8 sps:$4 sm:$0xff]   ;;  %v4282_v18 = vld [vmem:[%s5558_s3 + $0x1e4] ss:$8 sps:$4 sm:$0xff]  }
 0x1ce   : > { %1770 = vmatprep.subr.bf16.mxu1 %v4201_v42  ;;  %2312 = vmatprep.subr.bf16.mxu0 %v4204_v43  ;;  %v4277_v42 = vld [vmem:[#allocation6 + $0x1e0] ss:$8 sps:$4 sm:$0xff]   ;;  %v4280_v43 = vld [vmem:[%s5558_s3 + $0x1e0] ss:$8 sps:$4 sm:$0xff]  }
 0x1cf   : > { %1737 = vmatprep.mubr.bf16.mxu1 %v4956_v30  ;;  %2279 = vmatprep.mubr.bf16.mxu0 %v4956_v30  ;;  %v4211_v30 = vld [vmem:[#allocation6 + $0x130] ss:$8 sps:$4 sm:$0xff]  }
 0x1d1   : > { %1771 = vmatpush1.bf16.msra.mxu1 %v4199_v44  ;;  %2313 = vmatpush1.bf16.msra.mxu0 %v4202_v45  ;;  %v4285_v44 = vld [vmem:[#allocation6 + $0x1f4] ss:$8 sps:$4 sm:$0xff]   ;;  %v4288_v45 = vld [vmem:[%s5558_s3 + $0x1f4] ss:$8 sps:$4 sm:$0xff]  }
 0x1d2   : > { %1772 = vmatprep.subr.bf16.mxu1 %v4207_v21  ;;  %2314 = vmatprep.subr.bf16.mxu0 %v4210_v20  ;;  %v4283_v21 = vld [vmem:[#allocation6 + $0x1f0] ss:$8 sps:$4 sm:$0xff]   ;;  %v4286_v20 = vld [vmem:[%s5558_s3 + $0x1f0] ss:$8 sps:$4 sm:$0xff]  }
 0x1d4   : > { %1738 = vmatmul.mubr.bf16.gmra.mrb[36].mxu1 %v4949_v26  ;;  %2280 = vmatmul.mubr.bf16.gmra.mrb[36].mxu0 %v4949_v26  ;;  %v4217_v26 = vld [vmem:[#allocation6 + $0x140] ss:$8 sps:$4 sm:$0xff]  }
 0x1d5   : > { %1773 = vmatpush1.bf16.msra.mxu1 %v4205_v46  ;;  %2315 = vmatpush1.bf16.msra.mxu0 %v4208_v54  ;;  %v4291_v46 = vld [vmem:[%s5559_s4 + $0x4] ss:$8 sps:$4 sm:$0xff]   ;;  %v4289_v54 = vld [vmem:[%s5559_s4] ss:$8 sps:$4 sm:$0xff]  }
 0x1d6   : > { %1774 = vmatprep.subr.bf16.mxu1 %v4213_v55  ;;  %2316 = vmatprep.subr.bf16.mxu0 %v4216_v56  ;;  %v4294_v55 = vld [vmem:[%s5559_s4 + $0x14] ss:$8 sps:$4 sm:$0xff]   ;;  %v4292_v56 = vld [vmem:[%s5559_s4 + $0x10] ss:$8 sps:$4 sm:$0xff]  }
 0x1d7   : > { %1747 = vmatprep.mubr.bf16.mxu1 %v4988_v6  ;;  %2289 = vmatprep.mubr.bf16.mxu0 %v4988_v6  ;;  %v4223_v6 = vld [vmem:[#allocation6 + $0x150] ss:$8 sps:$4 sm:$0xff]  }
 0x1d9   : > { %1775 = vmatpush1.bf16.msra.mxu1 %v4211_v30  ;;  %2317 = vmatpush1.bf16.msra.mxu0 %v4214_v57  ;;  %v4297_v30 = vld [vmem:[%s5559_s4 + $0x24] ss:$8 sps:$4 sm:$0xff]   ;;  %v4298_v57 = vld [vmem:[%s5559_s4 + $0x30] ss:$8 sps:$4 sm:$0xff]  }
 0x1da   : > { %1776 = vmatprep.subr.bf16.mxu1 %v4219_v58  ;;  %2318 = vmatprep.subr.bf16.mxu0 %v4222_v59  ;;  %v4303_v58 = vld [vmem:[%s5559_s4 + $0x44] ss:$8 sps:$4 sm:$0xff]   ;;  %v4304_v59 = vld [vmem:[%s5559_s4 + $0x50] ss:$8 sps:$4 sm:$0xff]  }
 0x1dc   : > { %1748 = vmatmul.mubr.bf16.gmra.mrb[40].mxu1 %v4981_v2  ;;  %2290 = vmatmul.mubr.bf16.gmra.mrb[40].mxu0 %v4981_v2  ;;  %v4229_v2 = vld [vmem:[#allocation6 + $0x160] ss:$8 sps:$4 sm:$0xff]  }
 0x1dd   : > { %1777 = vmatpush1.bf16.msra.mxu1 %v4217_v26  ;;  %2319 = vmatpush1.bf16.msra.mxu0 %v4220_v60  ;;  %v4309_v26 = vld [vmem:[%s5559_s4 + $0x64] ss:$8 sps:$4 sm:$0xff]   ;;  %v4310_v60 = vld [vmem:[%s5559_s4 + $0x70] ss:$8 sps:$4 sm:$0xff]  }
 0x1de   : > { %1778 = vmatprep.subr.bf16.mxu1 %v4225_v61  ;;  %2320 = vmatprep.subr.bf16.mxu0 %v4228_v62  ;;  %v4315_v61 = vld [vmem:[%s5559_s4 + $0x84] ss:$8 sps:$4 sm:$0xff]   ;;  %v4313_v62 = vld [vmem:[%s5559_s4 + $0x80] ss:$8 sps:$4 sm:$0xff]  }
 0x1df   : > { %1757 = vmatprep.mubr.bf16.mxu1 %v5020_v53  ;;  %2299 = vmatprep.mubr.bf16.mxu0 %v5020_v53  ;;  %v4235_v53 = vld [vmem:[#allocation6 + $0x170] ss:$8 sps:$4 sm:$0xff]  }
 0x1e1   : > { %1779 = vmatpush1.bf16.msra.mxu1 %v4223_v6  ;;  %2321 = vmatpush1.bf16.msra.mxu0 %v4226_v63  ;;  %v4316_v6 = vld [vmem:[%s5559_s4 + $0x90] ss:$8 sps:$4 sm:$0xff]   ;;  %v4321_v63 = vld [vmem:[%s5559_s4 + $0xa4] ss:$8 sps:$4 sm:$0xff]  }
 0x1e2   : > { %1780 = vmatprep.subr.bf16.mxu1 %v4231_v0  ;;  %2322 = vmatprep.subr.bf16.mxu0 %v4234_v48  ;;  %v4319_v0 = vld [vmem:[%s5559_s4 + $0xa0] ss:$8 sps:$4 sm:$0xff]   ;;  %v4324_v48 = vld [vmem:[%s5559_s4 + $0xb4] ss:$8 sps:$4 sm:$0xff]  }
 0x1e4   : > { %1758 = vmatmul.mubr.bf16.gmra.mrb[44].mxu1 %v5013_v51  ;;  %2300 = vmatmul.mubr.bf16.gmra.mrb[44].mxu0 %v5013_v51  ;;  %v4241_v51 = vld [vmem:[#allocation6 + $0x180] ss:$8 sps:$4 sm:$0xff]  }
 0x1e5   : > { %1781 = vmatpush1.bf16.msra.mxu1 %v4229_v2  ;;  %1800 = vmatprep.mubr.bf16.mxu1 %v4921_v49  ;;  %v4322_v2 = vld [vmem:[%s5559_s4 + $0xb0] ss:$8 sps:$4 sm:$0xff]  }
 0x1e6   : > { %2323 = vmatpush1.bf16.msra.mxu0 %v4232_v3  ;;  %2342 = vmatprep.mubr.bf16.mxu0 %v4921_v49  ;;  %v4249_v49 = vld [vmem:[#allocation6 + $0x194] ss:$8 sps:$4 sm:$0xff]   ;;  %v4327_v3 = vld [vmem:[%s5559_s4 + $0xc4] ss:$8 sps:$4 sm:$0xff]  }
 0x1e7   : > { %1782 = vmatprep.subr.bf16.mxu1 %v4237_v4  ;;  %2324 = vmatprep.subr.bf16.mxu0 %v4240_v7  ;;  %v4325_v4 = vld [vmem:[%s5559_s4 + $0xc0] ss:$8 sps:$4 sm:$0xff]   ;;  %v4330_v7 = vld [vmem:[%s5559_s4 + $0xd4] ss:$8 sps:$4 sm:$0xff]  }
 0x1e9   : > { %1783 = vmatpush1.bf16.msra.mxu1 %v4235_v53  ;;  %v4328_v53 = vld [vmem:[%s5559_s4 + $0xd0] ss:$8 sps:$4 sm:$0xff]  }
 0x1ea   : > { %2325 = vmatpush1.bf16.msra.mxu0 %v4238_v8  ;;  %1784 = vmatprep.subr.bf16.mxu1 %v4243_v9 }
 0x1eb   : > { %2326 = vmatprep.subr.bf16.mxu0 %v4246_v10 }
 0x1ed   : > { %1785 = vmatpush1.bf16.msra.mxu1 %v4241_v51  ;;  %v4333_v51 = vld [vmem:[%s5559_s4 + $0xe4] ss:$8 sps:$4 sm:$0xff]  }
 0x1ee   : > { %2327 = vmatpush1.bf16.msra.mxu0 %v4244_v11  ;;  %1786 = vmatprep.subr.bf16.mxu1 %v4249_v49  ;;  %v4331_v49 = vld [vmem:[%s5559_s4 + $0xe0] ss:$8 sps:$4 sm:$0xff]  }
 0x1ef   : > { %2328 = vmatprep.subr.bf16.mxu0 %v4252_v14  ;;  %v4336_v14 = vld [vmem:[%s5559_s4 + $0xf4] ss:$8 sps:$4 sm:$0xff]  }
 0x1f1   : > { %1787 = vmatpush1.bf16.msra.mxu1 %v4247_v15  ;;  %v4334_v15 = vld [vmem:[%s5559_s4 + $0xf0] ss:$8 sps:$4 sm:$0xff]  }
 0x1f2   : > { %2329 = vmatpush1.bf16.msra.mxu0 %v4250_v17  ;;  %1788 = vmatprep.subr.bf16.mxu1 %v4255_v22 }
 0x1f3   : > { %2330 = vmatprep.subr.bf16.mxu0 %v4258_v23 }
 0x1f5   : > { %1789 = vmatpush1.bf16.msra.mxu1 %v4253_v24 }
 0x1f6   : > { %2331 = vmatpush1.bf16.msra.mxu0 %v4256_v27  ;;  %1790 = vmatprep.subr.bf16.mxu1 %v4261_v28 }
 0x1f7   : > { %2332 = vmatprep.subr.bf16.mxu0 %v4264_v31 }
 0x1f9   : > { %1791 = vmatpush1.bf16.msra.mxu1 %v4259_v32 }
 0x1fa   : > { %2333 = vmatpush1.bf16.msra.mxu0 %v4262_v33  ;;  %1792 = vmatprep.subr.bf16.mxu1 %v4267_v34 }
 0x1fb   : > { %2334 = vmatprep.subr.bf16.mxu0 %v4270_v35 }
 0x1fd   : > { %1793 = vmatpush1.bf16.msra.mxu1 %v4265_v36 }
 0x1fe   : > { %2335 = vmatpush1.bf16.msra.mxu0 %v4268_v37  ;;  %1794 = vmatprep.subr.bf16.mxu1 %v4273_v38  ;;  %v1841_v37 = vld [vmem:[%s5562_s7] sm:$0x3] }
 0x1ff   : > { %2336 = vmatprep.subr.bf16.mxu0 %v4276_v39  ;;  %v5341_v38 = vrot.slane %v1841_v37, %v516_v13  ;;  %v5345_v39 = vrot.slane %v1841_v37, %v520_v16 }
 0x201   : > { %1795 = vmatpush1.bf16.msra.mxu1 %v4271_v19 }
 0x202   : > { %2337 = vmatpush1.bf16.msra.mxu0 %v4274_v40  ;;  %1796 = vmatprep.subr.bf16.mxu1 %v4279_v41 }
 0x203   : > { %2338 = vmatprep.subr.bf16.mxu0 %v4282_v18 }
 0x205   : > { %1797 = vmatpush1.bf16.msra.mxu1 %v4277_v42 }
 0x206   : > { %2339 = vmatpush1.bf16.msra.mxu0 %v4280_v43  ;;  %1798 = vmatprep.subr.bf16.mxu1 %v4285_v44 }
 0x207   : > { %2340 = vmatprep.subr.bf16.mxu0 %v4288_v45 }
 0x209   : > { %1799 = vmatpush1.bf16.msra.mxu1 %v4283_v21 }
 0x20a   : > { %2341 = vmatpush1.bf16.msra.mxu0 %v4286_v20  ;;  %2712 = vmatprep.subr.bf16.mxu1 %v4291_v46 }
 0x20b   : > { %2599 = vmatprep.subr.bf16.mxu0 %v4291_v46 }
 0x20c   : > { %1801 = vmatmul.mubr.bf16.vlgmr.msra.gmra.mrb[32].mxu1 %v4917_v47 }
 0x20d   : > { %2343 = vmatmul.mubr.bf16.vlgmr.msra.gmra.mrb[32].mxu0 %v4917_v47  ;;  %1810 = vmatprep.mubr.bf16.mxu1 %v4954_v29  ;;  %v4295_v47 = vld [vmem:[%s5559_s4 + $0x20] ss:$8 sps:$4 sm:$0xff]  }
 0x20e   : > { %2352 = vmatprep.mubr.bf16.mxu0 %v4954_v29  ;;  %2600 = vmatpush1.bf16.msra.mxu0 %v4289_v54  ;;  %v4300_v29 = vld [vmem:[%s5559_s4 + $0x34] ss:$8 sps:$4 sm:$0xff]  }
 0x20f   : > { %2601 = vmatprep.subr.bf16.mxu0 %v4294_v55  ;;  %2713 = vmatpush1.bf16.msra.mxu1 %v4289_v54 }
 0x210   : > { %2714 = vmatprep.subr.bf16.mxu1 %v4294_v55 }
 0x212   : > { %2602 = vmatpush1.bf16.msra.mxu0 %v4292_v56 }
 0x213   : > { %2603 = vmatprep.subr.bf16.mxu0 %v4297_v30  ;;  %2715 = vmatpush1.bf16.msra.mxu1 %v4292_v56 }
 0x214   : > { %1811 = vmatmul.mubr.bf16.gmra.mrb[36].mxu1 %v4947_v25  ;;  %2716 = vmatprep.subr.bf16.mxu1 %v4297_v30 }
 0x215   : > { %2353 = vmatmul.mubr.bf16.gmra.mrb[36].mxu0 %v4947_v25  ;;  %1820 = vmatprep.mubr.bf16.mxu1 %v4986_v5  ;;  %v4301_v25 = vld [vmem:[%s5559_s4 + $0x40] ss:$8 sps:$4 sm:$0xff]  }
 0x216   : > { %2362 = vmatprep.mubr.bf16.mxu0 %v4986_v5  ;;  %2604 = vmatpush1.bf16.msra.mxu0 %v4295_v47  ;;  %v4306_v5 = vld [vmem:[%s5559_s4 + $0x54] ss:$8 sps:$4 sm:$0xff]  }
 0x217   : > { %2605 = vmatprep.subr.bf16.mxu0 %v4300_v29  ;;  %2717 = vmatpush1.bf16.msra.mxu1 %v4295_v47 }
 0x218   : > { %2718 = vmatprep.subr.bf16.mxu1 %v4300_v29 }
 0x21a   : > { %2606 = vmatpush1.bf16.msra.mxu0 %v4298_v57 }
 0x21b   : > { %2607 = vmatprep.subr.bf16.mxu0 %v4303_v58  ;;  %2719 = vmatpush1.bf16.msra.mxu1 %v4298_v57 }
 0x21c   : > { %1821 = vmatmul.mubr.bf16.gmra.mrb[40].mxu1 %v4979_v1  ;;  %2720 = vmatprep.subr.bf16.mxu1 %v4303_v58 }
 0x21d   : > { %2363 = vmatmul.mubr.bf16.gmra.mrb[40].mxu0 %v4979_v1  ;;  %1830 = vmatprep.mubr.bf16.mxu1 %v5018_v52  ;;  %v4307_v1 = vld [vmem:[%s5559_s4 + $0x60] ss:$8 sps:$4 sm:$0xff]  }
 0x21e   : > { %2372 = vmatprep.mubr.bf16.mxu0 %v5018_v52  ;;  %2608 = vmatpush1.bf16.msra.mxu0 %v4301_v25  ;;  %v4312_v52 = vld [vmem:[%s5559_s4 + $0x74] ss:$8 sps:$4 sm:$0xff]  }
 0x21f   : > { %2609 = vmatprep.subr.bf16.mxu0 %v4306_v5  ;;  %2721 = vmatpush1.bf16.msra.mxu1 %v4301_v25 }
 0x220   : > { %2722 = vmatprep.subr.bf16.mxu1 %v4306_v5 }
 0x222   : > { %2610 = vmatpush1.bf16.msra.mxu0 %v4304_v59 }
 0x223   : > { %2611 = vmatprep.subr.bf16.mxu0 %v4309_v26  ;;  %2723 = vmatpush1.bf16.msra.mxu1 %v4304_v59 }
 0x224   : > { %1831 = vmatmul.mubr.bf16.gmra.mrb[44].mxu1 %v5011_v50  ;;  %2724 = vmatprep.subr.bf16.mxu1 %v4309_v26 }
 0x225   : > { %2373 = vmatmul.mubr.bf16.gmra.mrb[44].mxu0 %v5011_v50  ;;  %v4318_v50 = vld [vmem:[%s5559_s4 + $0x94] ss:$8 sps:$4 sm:$0xff]  }
 0x226   : > { %2612 = vmatpush1.bf16.msra.mxu0 %v4307_v1 }
 0x227   : > { %2613 = vmatprep.subr.bf16.mxu0 %v4312_v52  ;;  %2725 = vmatpush1.bf16.msra.mxu1 %v4307_v1 }
 0x228   : > { %2726 = vmatprep.subr.bf16.mxu1 %v4312_v52 }
 0x22a   : > { %2614 = vmatpush1.bf16.msra.mxu0 %v4310_v60 }
 0x22b   : > { %2615 = vmatprep.subr.bf16.mxu0 %v4315_v61  ;;  %2727 = vmatpush1.bf16.msra.mxu1 %v4310_v60 }
 0x22c   : > { %2728 = vmatprep.subr.bf16.mxu1 %v4315_v61 }
 0x22e   : > { %2616 = vmatpush1.bf16.msra.mxu0 %v4313_v62 }
 0x22f   : > { %2617 = vmatprep.subr.bf16.mxu0 %v4318_v50  ;;  %2729 = vmatpush1.bf16.msra.mxu1 %v4313_v62 }
 0x230   : > { %2730 = vmatprep.subr.bf16.mxu1 %v4318_v50 }
 0x232   : > { %2618 = vmatpush1.bf16.msra.mxu0 %v4316_v6 }
 0x233   : > { %2619 = vmatprep.subr.bf16.mxu0 %v4321_v63  ;;  %2731 = vmatpush1.bf16.msra.mxu1 %v4316_v6 }
 0x234   : > { %2732 = vmatprep.subr.bf16.mxu1 %v4321_v63 }
 0x236   : > { %2620 = vmatpush1.bf16.msra.mxu0 %v4319_v0 }
 0x237   : > { %2621 = vmatprep.subr.bf16.mxu0 %v4324_v48  ;;  %2733 = vmatpush1.bf16.msra.mxu1 %v4319_v0 }
 0x238   : > { %2734 = vmatprep.subr.bf16.mxu1 %v4324_v48 }
 0x23a   : > { %2622 = vmatpush1.bf16.msra.mxu0 %v4322_v2 }
 0x23b   : > { %2623 = vmatprep.subr.bf16.mxu0 %v4327_v3  ;;  %2735 = vmatpush1.bf16.msra.mxu1 %v4322_v2 }
 0x23c   : > { %2736 = vmatprep.subr.bf16.mxu1 %v4327_v3 }
 0x23e   : > { %2624 = vmatpush1.bf16.msra.mxu0 %v4325_v4 }
 0x23f   : > { %2625 = vmatprep.subr.bf16.mxu0 %v4330_v7  ;;  %2737 = vmatpush1.bf16.msra.mxu1 %v4325_v4 }
 0x240   : > { %2738 = vmatprep.subr.bf16.mxu1 %v4330_v7 }
 0x242   : > { %2626 = vmatpush1.bf16.msra.mxu0 %v4328_v53 }
 0x243   : > { %2739 = vmatpush1.bf16.msra.mxu1 %v4328_v53  ;;  %2627 = vmatprep.subr.bf16.mxu0 %v4333_v51 }
 0x244   : > { %2740 = vmatprep.subr.bf16.mxu1 %v4333_v51 }
 0x246   : > { %2628 = vmatpush1.bf16.msra.mxu0 %v4331_v49 }
 0x247   : > { %2741 = vmatpush1.bf16.msra.mxu1 %v4331_v49  ;;  %2629 = vmatprep.subr.bf16.mxu0 %v4336_v14 }
 0x248   : > { %2742 = vmatprep.subr.bf16.mxu1 %v4336_v14 }
 0x24a   : > { %2630 = vmatpush1.bf16.msra.mxu0 %v4334_v15 }
 0x24b   : > { %2743 = vmatpush1.bf16.msra.mxu1 %v4334_v15 }
 0x25f   : > { %v5292_v8 = vpop.f32.mrb[16].mxu1 }
 0x260   : > { %v5294_v9 = vpop.f32.mrb[17].mxu1 }
 0x261   : > { %v5296_v10 = vpop.f32.mrb[18].mxu1 }
 0x262   : > { %v5301_v11 = vpop.f32.mrb[19].mxu1 }
 0x267   : > { %v5312_v17 = vpop.f32.mrb[20].mxu1 }
 0x268   : > { %v5314_v22 = vpop.f32.mrb[21].mxu1 }
 0x269   : > { %v5316_v23 = vpop.f32.mrb[22].mxu1 }
 0x26a   : > { %v5318_v24 = vpop.f32.mrb[23].mxu1 }
 0x26f   : > { %v5320_v27 = vpop.f32.mrb[24].mxu1 }
 0x270   : > { %v5322_v28 = vpop.f32.mrb[25].mxu1 }
 0x271   : > { %v5324_v31 = vpop.f32.mrb[26].mxu1 }
 0x272   : > { %v5326_v32 = vpop.f32.mrb[27].mxu1 }
 0x277   : > { %v5328_v33 = vpop.f32.mrb[28].mxu1 }
 0x278   : > { %v5330_v34 = vpop.f32.mrb[29].mxu1 }
 0x279   : > { %v5332_v35 = vpop.f32.mrb[30].mxu1 }
 0x27a   : > { %v5334_v36 = vpop.f32.mrb[31].mxu1 }
 0x2e0   : > { %v2344_v19 = vpop.f32.mrb[32].mxu0 }
 0x2e1   : > { %v3837_v40 = vadd.f32 %v2344_v19, %v5341_v38  ;;  %v2346_v41 = vpop.f32.mrb[33].mxu0 }
 0x2e2   : > { %v3838_v18 = vadd.f32 %v2346_v41, %v5345_v39  ;;  %v2348_v42 = vpop.f32.mrb[34].mxu0 }
 0x2e3   : > { %v3839_v43 = vadd.f32 %v2348_v42, %v5341_v38  ;;  %v2350_v44 = vpop.f32.mrb[35].mxu0  ;;  %v2383_v21 = vmax.f32 %v3837_v40, 0.0 }
 0x2e4   : > { %v3840_v45 = vadd.f32 %v2350_v44, %v5345_v39  ;;  %v2384_v13 = vmax.f32 %v3838_v18, 0.0 }
 0x2e5   : > { %v2385_v20 = vmax.f32 %v3839_v43, 0.0 }
 0x2e6   : > { %v2386_v46 = vmax.f32 %v3840_v45, 0.0 }
 0x2e7   : > { %v2399_v54 = vpack.c.bf16 %v2385_v20, %v2383_v21 }
 0x2e8   : > { %v2400_v12 = vpack.c.bf16 %v2386_v46, %v2384_v13  ;;  %v2354_v16 = vpop.f32.mrb[36].mxu0  ;;  %v4337_v13 = vld [vmem:[#allocation7 + $0x40] sm:$0xff]  }
 0x2e9   : > { %v3841_v55 = vadd.f32 %v2354_v16, %v5341_v38  ;;  %v2356_v56 = vpop.f32.mrb[37].mxu0  ;;  %v4338_v46 = vld [vmem:[#allocation7] sm:$0xff]   ;;  %3745 = vmatprep.subr.bf16.mxu0 %v4337_v13  ;;  %v4341_v16 = vld [vmem:[#allocation7 + $0x50] sm:$0xff]  }
 0x2ea   : > { %v3842_v30 = vadd.f32 %v2356_v56, %v5345_v39  ;;  %v2358_v47 = vpop.f32.mrb[38].mxu0  ;;  %2631 = vmatprep.mubr.bf16.mxu0 %v2400_v12  ;;  %v4340_v12 = vld [vmem:[#allocation7 + $0x8] sm:$0xff]   ;;  %v4343_v56 = vld [vmem:[#allocation7 + $0x58] sm:$0xff]  }
 0x2eb   : > { %v3843_v29 = vadd.f32 %v2358_v47, %v5341_v38  ;;  %v2360_v57 = vpop.f32.mrb[39].mxu0  ;;  %2632 = vmatmul.mubr.bf16.vlgmr.msra.gmra.mrb[16].mxu0 %v2399_v54  ;;  %v2387_v25 = vmax.f32 %v3841_v55, 0.0  ;;  %v4339_v54 = vld [vmem:[#allocation7 + $0x48] sm:$0xff]   ;;  %v4342_v55 = vld [vmem:[#allocation7 + $0x10] sm:$0xff]   ;;  %v4345_v47 = vld [vmem:[#allocation7 + $0x60] sm:$0xff]  }
 0x2ec   : > { %v3844_v58 = vadd.f32 %v2360_v57, %v5345_v39  ;;  %v2388_v59 = vmax.f32 %v3842_v30, 0.0  ;;  %3746 = vmatpush3.bf16.msra.mxu0 %v4338_v46  ;;  %v4344_v30 = vld [vmem:[#allocation7 + $0x18] sm:$0xff]   ;;  %v4347_v57 = vld [vmem:[#allocation7 + $0x68] sm:$0xff]  }
 0x2ed   : > { %v2389_v5 = vmax.f32 %v3843_v29, 0.0  ;;  %3747 = vmatprep.subr.bf16.mxu0 %v4339_v54  ;;  %v4346_v29 = vld [vmem:[#allocation7 + $0x20] sm:$0xff]  }
 0x2ee   : > { %v2390_v26 = vmax.f32 %v3844_v58, 0.0  ;;  %v4348_v58 = vld [vmem:[#allocation7 + $0x28] sm:$0xff]  }
 0x2ef   : > { %v2401_v1 = vpack.c.bf16 %v2389_v5, %v2387_v25 }
 0x2f0   : > { %v2402_v52 = vpack.c.bf16 %v2390_v26, %v2388_v59  ;;  %v2364_v60 = vpop.f32.mrb[40].mxu0  ;;  %3748 = vmatpush3.bf16.msra.mxu0 %v4340_v12 }
 0x2f1   : > { %v3845_v61 = vadd.f32 %v2364_v60, %v5341_v38  ;;  %v2366_v62 = vpop.f32.mrb[41].mxu0  ;;  %3749 = vmatprep.subr.bf16.mxu0 %v4341_v16 }
 0x2f2   : > { %v3846_v50 = vadd.f32 %v2366_v62, %v5345_v39  ;;  %v2368_v6 = vpop.f32.mrb[42].mxu0  ;;  %2641 = vmatprep.mubr.bf16.mxu0 %v2402_v52 }
 0x2f3   : > { %v3847_v63 = vadd.f32 %v2368_v6, %v5341_v38  ;;  %v2370_v0 = vpop.f32.mrb[43].mxu0  ;;  %2642 = vmatmul.mubr.bf16.gmra.mrb[20].mxu0 %v2401_v1  ;;  %v2391_v2 = vmax.f32 %v3845_v61, 0.0 }
 0x2f4   : > { %v3848_v48 = vadd.f32 %v2370_v0, %v5345_v39  ;;  %v2392_v4 = vmax.f32 %v3846_v50, 0.0  ;;  %3750 = vmatpush3.bf16.msra.mxu0 %v4342_v55 }
 0x2f5   : > { %v2393_v3 = vmax.f32 %v3847_v63, 0.0  ;;  %3751 = vmatprep.subr.bf16.mxu0 %v4343_v56 }
 0x2f6   : > { %v2394_v7 = vmax.f32 %v3848_v48, 0.0 }
 0x2f7   : > { %v2403_v53 = vpack.c.bf16 %v2393_v3, %v2391_v2 }
 0x2f8   : > { %v2404_v51 = vpack.c.bf16 %v2394_v7, %v2392_v4  ;;  %v2374_v49 = vpop.f32.mrb[44].mxu0  ;;  %3752 = vmatpush3.bf16.msra.mxu0 %v4344_v30 }
 0x2f9   : > { %v3849_v14 = vadd.f32 %v2374_v49, %v5341_v38  ;;  %v2376_v15 = vpop.f32.mrb[45].mxu0  ;;  %3753 = vmatprep.subr.bf16.mxu0 %v4345_v47 }
 0x2fa   : > { %v3850_v37 = vadd.f32 %v2376_v15, %v5345_v39  ;;  %v2378_v19 = vpop.f32.mrb[46].mxu0  ;;  %2651 = vmatprep.mubr.bf16.mxu0 %v2404_v51 }
 0x2fb   : > { %v3851_v40 = vadd.f32 %v2378_v19, %v5341_v38  ;;  %v2380_v41 = vpop.f32.mrb[47].mxu0  ;;  %2652 = vmatmul.mubr.bf16.gmra.mrb[24].mxu0 %v2403_v53  ;;  %v2395_v42 = vmax.f32 %v3849_v14, 0.0 }
 0x2fc   : > { %v3852_v18 = vadd.f32 %v2380_v41, %v5345_v39  ;;  %v2396_v44 = vmax.f32 %v3850_v37, 0.0  ;;  %3754 = vmatpush3.bf16.msra.mxu0 %v4346_v29 }
 0x2fd   : > { %v2397_v43 = vmax.f32 %v3851_v40, 0.0  ;;  %3755 = vmatprep.subr.bf16.mxu0 %v4347_v57 }
 0x2fe   : > { %v2398_v45 = vmax.f32 %v3852_v18, 0.0 }
 0x2ff   : > { %v2405_v21 = vpack.c.bf16 %v2397_v43, %v2395_v42 }
 0x300   : > { %v2406_v20 = vpack.c.bf16 %v2398_v45, %v2396_v44  ;;  %3756 = vmatpush3.bf16.msra.mxu0 %v4348_v58 }
 0x302   : > { %2661 = vmatprep.mubr.bf16.mxu0 %v2406_v20 }
 0x303   : > { %2662 = vmatmul.mubr.bf16.gmra.mrb[28].mxu0 %v2405_v21 }
 0x3be   : > { %v2633_v25 = vpop.f32.mrb[16].mxu0 }
 0x3bf   : > { %v3821_v5 = vadd.f32 %v2633_v25, %v5292_v8  ;;  %v2635_v59 = vpop.f32.mrb[17].mxu0 }
 0x3c0   : > { %v3822_v26 = vadd.f32 %v2635_v59, %v5294_v9  ;;  %v2637_v1 = vpop.f32.mrb[18].mxu0 }
 0x3c1   : > { %v2672_v52 = vadd.f32 %v3821_v5, %v5341_v38  ;;  %v3823_v60 = vadd.f32 %v2637_v1, %v5296_v10  ;;  %v2639_v61 = vpop.f32.mrb[19].mxu0 }
 0x3c2   : > { %v2673_v62 = vadd.f32 %v3822_v26, %v5345_v39  ;;  %v3824_v50 = vadd.f32 %v2639_v61, %v5301_v11 }
 0x3c3   : > { %v2674_v6 = vadd.f32 %v3823_v60, %v5341_v38  ;;  %v2688_v0 = vmax.f32 %v2672_v52, 0.0 }
 0x3c4   : > { %v2675_v63 = vadd.f32 %v3824_v50, %v5345_v39  ;;  %v2689_v8 = vmax.f32 %v2673_v62, 0.0 }
 0x3c5   : > { %v2690_v48 = vmax.f32 %v2674_v6, 0.0 }
 0x3c6   : > { %v2691_v2 = vmax.f32 %v2675_v63, 0.0  ;;  %v2643_v3 = vpop.f32.mrb[20].mxu0 }
 0x3c7   : > { %v2704_v9 = vpack.c.bf16 %v2690_v48, %v2688_v0  ;;  %v3825_v4 = vadd.f32 %v2643_v3, %v5312_v17  ;;  %v2645_v7 = vpop.f32.mrb[21].mxu0  ;;  %v4350_v0 = vld [vmem:[#allocation7 + $0x30] sm:$0xff]   ;;  %v4351_v48 = vld [vmem:[#allocation7 + $0x78] sm:$0xff]  }
 0x3c8   : > { %v3826_v10 = vadd.f32 %v2645_v7, %v5314_v22  ;;  %v2647_v53 = vpop.f32.mrb[22].mxu0  ;;  %v2705_v51 = vpack.c.bf16 %v2691_v2, %v2689_v8 }
 0x3c9   : > { %v2676_v49 = vadd.f32 %v3825_v4, %v5341_v38  ;;  %v3827_v11 = vadd.f32 %v2647_v53, %v5316_v23  ;;  %v2649_v14 = vpop.f32.mrb[23].mxu0 }
 0x3ca   : > { %v2677_v15 = vadd.f32 %v3826_v10, %v5345_v39  ;;  %v3828_v37 = vadd.f32 %v2649_v14, %v5318_v24  ;;  %2744 = vmatprep.mubr.bf16.mxu1 %v2705_v51 }
 0x3cb   : > { %v2678_v19 = vadd.f32 %v3827_v11, %v5341_v38  ;;  %2745 = vmatmul.mubr.bf16.vlgmr.msra.gmra.mrb[32].mxu1 %v2704_v9  ;;  %v2692_v40 = vmax.f32 %v2676_v49, 0.0 }
 0x3cc   : > { %v2679_v17 = vadd.f32 %v3828_v37, %v5345_v39  ;;  %v2693_v22 = vmax.f32 %v2677_v15, 0.0 }
 0x3cd   : > { %v2694_v41 = vmax.f32 %v2678_v19, 0.0 }
 0x3ce   : > { %v2695_v18 = vmax.f32 %v2679_v17, 0.0  ;;  %v2653_v42 = vpop.f32.mrb[24].mxu0 }
 0x3cf   : > { %v3829_v43 = vadd.f32 %v2653_v42, %v5320_v27  ;;  %v2655_v44 = vpop.f32.mrb[25].mxu0  ;;  %v2706_v23 = vpack.c.bf16 %v2694_v41, %v2692_v40 }
 0x3d0   : > { %v3830_v45 = vadd.f32 %v2655_v44, %v5322_v28  ;;  %v2657_v21 = vpop.f32.mrb[26].mxu0  ;;  %v2707_v20 = vpack.c.bf16 %v2695_v18, %v2693_v22 }
 0x3d1   : > { %v2680_v24 = vadd.f32 %v3829_v43, %v5341_v38  ;;  %v3831_v13 = vadd.f32 %v2657_v21, %v5324_v31  ;;  %v2659_v46 = vpop.f32.mrb[27].mxu0 }
 0x3d2   : > { %v2681_v54 = vadd.f32 %v3830_v45, %v5345_v39  ;;  %v3832_v12 = vadd.f32 %v2659_v46, %v5326_v32  ;;  %2754 = vmatprep.mubr.bf16.mxu1 %v2707_v20 }
 0x3d3   : > { %v2682_v16 = vadd.f32 %v3831_v13, %v5341_v38  ;;  %2755 = vmatmul.mubr.bf16.gmra.mrb[36].mxu1 %v2706_v23  ;;  %v2696_v55 = vmax.f32 %v2680_v24, 0.0 }
 0x3d4   : > { %v2683_v27 = vadd.f32 %v3832_v12, %v5345_v39  ;;  %v2697_v28 = vmax.f32 %v2681_v54, 0.0 }
 0x3d5   : > { %v2698_v56 = vmax.f32 %v2682_v16, 0.0 }
 0x3d6   : > { %v2699_v30 = vmax.f32 %v2683_v27, 0.0  ;;  %v2663_v47 = vpop.f32.mrb[28].mxu0 }
 0x3d7   : > { %v3833_v29 = vadd.f32 %v2663_v47, %v5328_v33  ;;  %v2665_v57 = vpop.f32.mrb[29].mxu0  ;;  %v2708_v31 = vpack.c.bf16 %v2698_v56, %v2696_v55 }
 0x3d8   : > { %v3834_v58 = vadd.f32 %v2665_v57, %v5330_v34  ;;  %v2667_v25 = vpop.f32.mrb[30].mxu0  ;;  %v2709_v5 = vpack.c.bf16 %v2699_v30, %v2697_v28 }
 0x3d9   : > { %v2684_v32 = vadd.f32 %v3833_v29, %v5341_v38  ;;  %v3835_v59 = vadd.f32 %v2667_v25, %v5332_v35  ;;  %v2669_v26 = vpop.f32.mrb[31].mxu0  ;;  %v4349_v35 = vld [vmem:[#allocation7 + $0x70] sm:$0xff]  }
 0x3da   : > { %v2685_v1 = vadd.f32 %v3834_v58, %v5345_v39  ;;  %v3836_v52 = vadd.f32 %v2669_v26, %v5334_v36  ;;  %2764 = vmatprep.mubr.bf16.mxu1 %v2709_v5  ;;  %3757 = vmatprep.subr.bf16.mxu0 %v4349_v35  ;;  %v4352_v36 = vld [vmem:[#allocation7 + $0x38] sm:$0xff]  }
 0x3db   : > { %v2686_v60 = vadd.f32 %v3835_v59, %v5341_v38  ;;  %2765 = vmatmul.mubr.bf16.gmra.mrb[40].mxu1 %v2708_v31  ;;  %v2700_v61 = vmax.f32 %v2684_v32, 0.0  ;;  %3758 = vmatpush3.bf16.msra.mxu0 %v4350_v0  ;;  %v4357_v35 = vld [vmem:[%s5565_s10 + $0x20] sm:$0xff]   ;;  %v4358_v0 = vld [vmem:[%s5565_s10 + $0x28] sm:$0xff]  }
 0x3dc   : > { %v2687_v33 = vadd.f32 %v3836_v52, %v5345_v39  ;;  %v2701_v34 = vmax.f32 %v2685_v1, 0.0  ;;  %3759 = vmatprep.subr.bf16.mxu0 %v4351_v48  ;;  %v4359_v48 = vld [vmem:[%s5565_s10 + $0x30] sm:$0xff]  }
 0x3dd   : > { %v2702_v62 = vmax.f32 %v2686_v60, 0.0 }
 0x3de   : > { %v2703_v50 = vmax.f32 %v2687_v33, 0.0 }
 0x3df   : > { %v2710_v6 = vpack.c.bf16 %v2702_v62, %v2700_v61  ;;  %3760 = vmatpush3.bf16.msra.mxu0 %v4352_v36  ;;  %v4360_v36 = vld [vmem:[%s5565_s10 + $0x38] sm:$0xff]  }
 0x3e0   : > { %v2711_v63 = vpack.c.bf16 %v2703_v50, %v2701_v34  ;;  %v4354_v50 = vld [vmem:[%s5565_s10 + $0x8] sm:$0xff]  }
 0x3e2   : > { %2774 = vmatprep.mubr.bf16.mxu1 %v2711_v63  ;;  %v4356_v63 = vld [vmem:[%s5565_s10 + $0x18] sm:$0xff]  }
 0x3e3   : > { %2775 = vmatmul.mubr.bf16.gmra.mrb[44].mxu1 %v2710_v6  ;;  %v4355_v6 = vld [vmem:[%s5565_s10 + $0x10] sm:$0xff]  }
 0x49e   : > { %v2746_v8 = vpop.f32.mrb[32].mxu1 }
 0x49f   : > { %v2748_v2 = vpop.f32.mrb[33].mxu1  ;;  %v5399_v4 = vadd.f32 %v2746_v8, %v5341_v38 }
 0x4a0   : > { %v5396_v3 = vadd.f32 %v2748_v2, %v5345_v39  ;;  %v2750_v9 = vpop.f32.mrb[34].mxu1  ;;  %v3670_v2 = vld [vmem:[#allocation9] ss:$0 sm:$0xff] }
 0x4a1   : > { %v5402_v7 = vadd.f32 %v2750_v9, %v5341_v38  ;;  %v2752_v10 = vpop.f32.mrb[35].mxu1  ;;  %v2801_v14 = vmax.f32 %v5399_v4, 0.0 }
 0x4a2   : > { %v5405_v53 = vadd.f32 %v2752_v10, %v5345_v39  ;;  %v2802_v49 = vmax.f32 %v5396_v3, 0.0 }
 0x4a3   : > { %v2803_v51 = vmax.f32 %v5402_v7, 0.0 }
 0x4a4   : > { %v2804_v11 = vmax.f32 %v5405_v53, 0.0 }
 0x4a5   : > { %v2817_v19 = vpack.c.bf16 %v2803_v51, %v2801_v14 }
 0x4a6   : > { %v2818_v15 = vpack.c.bf16 %v2804_v11, %v2802_v49  ;;  %v2756_v37 = vpop.f32.mrb[36].mxu1 }
 0x4a7   : > { %v2758_v17 = vpop.f32.mrb[37].mxu1  ;;  %v5423_v22 = vadd.f32 %v2756_v37, %v5341_v38 }
 0x4a8   : > { %v5420_v40 = vadd.f32 %v2758_v17, %v5345_v39  ;;  %v2760_v41 = vpop.f32.mrb[38].mxu1  ;;  %2992 = vmatprep.mubr.bf16.mxu0 %v2818_v15 }
 0x4a9   : > { %v5426_v18 = vadd.f32 %v2760_v41, %v5341_v38  ;;  %v2762_v42 = vpop.f32.mrb[39].mxu1  ;;  %2993 = vmatmul.mubr.bf16.vlgmr.msra.gmra.mrb[48].mxu0 %v2817_v19  ;;  %v2805_v21 = vmax.f32 %v5423_v22, 0.0 }
 0x4aa   : > { %v5429_v43 = vadd.f32 %v2762_v42, %v5345_v39  ;;  %v2806_v23 = vmax.f32 %v5420_v40, 0.0 }
 0x4ab   : > { %v2807_v44 = vmax.f32 %v5426_v18, 0.0 }
 0x4ac   : > { %v2808_v45 = vmax.f32 %v5429_v43, 0.0 }
 0x4ad   : > { %v2819_v13 = vpack.c.bf16 %v2807_v44, %v2805_v21 }
 0x4ae   : > { %v2820_v20 = vpack.c.bf16 %v2808_v45, %v2806_v23  ;;  %v2766_v24 = vpop.f32.mrb[40].mxu1 }
 0x4af   : > { %v2768_v46 = vpop.f32.mrb[41].mxu1  ;;  %v5447_v16 = vadd.f32 %v2766_v24, %v5341_v38 }
 0x4b0   : > { %v5444_v54 = vadd.f32 %v2768_v46, %v5345_v39  ;;  %v2770_v12 = vpop.f32.mrb[42].mxu1  ;;  %3000 = vmatprep.mubr.bf16.mxu0 %v2820_v20 }
 0x4b1   : > { %v5450_v27 = vadd.f32 %v2770_v12, %v5341_v38  ;;  %v2772_v55 = vpop.f32.mrb[43].mxu1  ;;  %3001 = vmatmul.mubr.bf16.gmra.mrb[52].mxu0 %v2819_v13  ;;  %v2809_v29 = vmax.f32 %v5447_v16, 0.0 }
 0x4b2   : > { %v5453_v56 = vadd.f32 %v2772_v55, %v5345_v39  ;;  %v2810_v30 = vmax.f32 %v5444_v54, 0.0 }
 0x4b3   : > { %v2811_v28 = vmax.f32 %v5450_v27, 0.0 }
 0x4b4   : > { %v2812_v47 = vmax.f32 %v5453_v56, 0.0 }
 0x4b5   : > { %v2821_v58 = vpack.c.bf16 %v2811_v28, %v2809_v29 }
 0x4b6   : > { %v2822_v57 = vpack.c.bf16 %v2812_v47, %v2810_v30  ;;  %v2776_v31 = vpop.f32.mrb[44].mxu1 }
 0x4b7   : > { %v2778_v25 = vpop.f32.mrb[45].mxu1  ;;  %v5471_v59 = vadd.f32 %v2776_v31, %v5341_v38 }
 0x4b8   : > { %v5468_v5 = vadd.f32 %v2778_v25, %v5345_v39  ;;  %v2780_v32 = vpop.f32.mrb[46].mxu1  ;;  %3008 = vmatprep.mubr.bf16.mxu0 %v2822_v57 }
 0x4b9   : > { %v5474_v26 = vadd.f32 %v2780_v32, %v5341_v38  ;;  %v2782_v1 = vpop.f32.mrb[47].mxu1  ;;  %3009 = vmatmul.mubr.bf16.gmra.mrb[56].mxu0 %v2821_v58  ;;  %v2813_v62 = vmax.f32 %v5471_v59, 0.0 }
 0x4ba   : > { %v5477_v52 = vadd.f32 %v2782_v1, %v5345_v39  ;;  %v2814_v33 = vmax.f32 %v5468_v5, 0.0  ;;  %v4353_v39 = vld [vmem:[%s5565_s10] sm:$0xff]  }
 0x4bb   : > { %v2815_v60 = vmax.f32 %v5474_v26, 0.0  ;;  %3797 = vmatprep.subr.bf16.mxu1 %v4353_v39 }
 0x4bc   : > { %v2816_v61 = vmax.f32 %v5477_v52, 0.0  ;;  %3798 = vmatpush3.bf16.msra.mxu1 %v4353_v39 }
 0x4bd   : > { %v2823_v38 = vpack.c.bf16 %v2815_v60, %v2813_v62  ;;  %3799 = vmatprep.subr.bf16.mxu1 %v4354_v50 }
 0x4be   : > { %v2824_v34 = vpack.c.bf16 %v2816_v61, %v2814_v33 }
 0x4c0   : > { %3016 = vmatprep.mubr.bf16.mxu0 %v2824_v34  ;;  %3800 = vmatpush3.bf16.msra.mxu1 %v4354_v50 }
 0x4c1   : > { %3017 = vmatmul.mubr.bf16.gmra.mrb[60].mxu0 %v2823_v38  ;;  %3801 = vmatprep.subr.bf16.mxu1 %v4355_v6 }
 0x4c4   : > { %3802 = vmatpush3.bf16.msra.mxu1 %v4355_v6 }
 0x4c5   : > { %3803 = vmatprep.subr.bf16.mxu1 %v4356_v63 }
 0x4c8   : > { %3804 = vmatpush3.bf16.msra.mxu1 %v4356_v63 }
 0x4c9   : > { %3805 = vmatprep.subr.bf16.mxu1 %v4357_v35 }
 0x4cc   : > { %3806 = vmatpush3.bf16.msra.mxu1 %v4357_v35 }
 0x4cd   : > { %3807 = vmatprep.subr.bf16.mxu1 %v4358_v0 }
 0x4d0   : > { %3808 = vmatpush3.bf16.msra.mxu1 %v4358_v0 }
 0x4d1   : > { %3809 = vmatprep.subr.bf16.mxu1 %v4359_v48 }
 0x4d4   : > { %3810 = vmatpush3.bf16.msra.mxu1 %v4359_v48 }
 0x4d5   : > { %3811 = vmatprep.subr.bf16.mxu1 %v4360_v36 }
 0x4d8   : > { %3812 = vmatpush3.bf16.msra.mxu1 %v4360_v36 }
 0x57c   : > { %v3761_v8 = vpop.f32.mrb[48].mxu0 }
 0x57d   : > { %v3762_v9 = vpop.f32.mrb[49].mxu0 }
 0x57e   : > { %v3763_v10 = vadd.f32 %v3762_v9, %v3761_v8  ;;  %v3764_v15 = vpop.f32.mrb[50].mxu0 }
 0x57f   : > { %v3765_v37 = vpop.f32.mrb[51].mxu0 }
 0x580   : > { %v2995_v19 = vadd.f32 %v3763_v10, %v3670_v2  ;;  %v3766_v17 = vadd.f32 %v3765_v37, %v3764_v15 }
 0x582   : > { %v3687_v41 = vmul.f32 -1.442695, %v2995_v19  ;;  %v2998_v42 = vadd.f32 %v3766_v17, %v3670_v2 }
 0x584   : > { %4361 = vpow2.f32 %v3687_v41  ;;  %v3688_v20 = vmul.f32 -1.442695, %v2998_v42  ;;  %v3767_v24 = vpop.f32.mrb[52].mxu0 }
 0x585   : > { %v3768_v13 = vpop.f32.mrb[53].mxu0 }
 0x586   : > { %4363 = vpow2.f32 %v3688_v20  ;;  %v3769_v46 = vadd.f32 %v3768_v13, %v3767_v24  ;;  %v3770_v12 = vpop.f32.mrb[54].mxu0 }
 0x587   : > { %v3771_v55 = vpop.f32.mrb[55].mxu0 }
 0x588   : > { %v3003_v57 = vadd.f32 %v3769_v46, %v3670_v2  ;;  %v3772_v31 = vadd.f32 %v3771_v55, %v3770_v12 }
 0x58a   : > { %v3689_v58 = vmul.f32 -1.442695, %v3003_v57  ;;  %v3006_v25 = vadd.f32 %v3772_v31, %v3670_v2 }
 0x58c   : > { %4365 = vpow2.f32 %v3689_v58  ;;  %v3690_v32 = vmul.f32 -1.442695, %v3006_v25  ;;  %v3773_v1 = vpop.f32.mrb[56].mxu0 }
 0x58d   : > { %v3774_v34 = vpop.f32.mrb[57].mxu0 }
 0x58e   : > { %v4362_v38 = vpop.eup %4361  ;;  %4367 = vpow2.f32 %v3690_v32  ;;  %v3775_v39 = vadd.f32 %v3774_v34, %v3773_v1  ;;  %v3776_v50 = vpop.f32.mrb[58].mxu0 }
 0x58f   : > { %v3049_v6 = vadd.f32 1.0, %v4362_v38  ;;  %v3777_v63 = vpop.f32.mrb[59].mxu0 }
 0x590   : > { %v4364_v35 = vpop.eup %4363  ;;  %v3011_v0 = vadd.f32 %v3775_v39, %v3670_v2  ;;  %v3778_v48 = vadd.f32 %v3777_v63, %v3776_v50 }
 0x591   : > { %4369 = vrcp.f32 %v3049_v6  ;;  %v3050_v36 = vadd.f32 1.0, %v4364_v35 }
 0x592   : > { %v3691_v8 = vmul.f32 -1.442695, %v3011_v0  ;;  %v3014_v9 = vadd.f32 %v3778_v48, %v3670_v2 }
 0x593   : > { %4371 = vrcp.f32 %v3050_v36 }
 0x594   : > { %4373 = vpow2.f32 %v3691_v8  ;;  %v3692_v10 = vmul.f32 -1.442695, %v3014_v9  ;;  %v3779_v15 = vpop.f32.mrb[60].mxu0 }
 0x595   : > { %v3780_v37 = vpop.f32.mrb[61].mxu0 }
 0x596   : > { %v4366_v19 = vpop.eup %4365  ;;  %4375 = vpow2.f32 %v3692_v10  ;;  %v3781_v17 = vadd.f32 %v3780_v37, %v3779_v15  ;;  %v3782_v41 = vpop.f32.mrb[62].mxu0 }
 0x597   : > { %v3051_v42 = vadd.f32 1.0, %v4366_v19  ;;  %v3783_v20 = vpop.f32.mrb[63].mxu0 }
 0x598   : > { %v4368_v24 = vpop.eup %4367  ;;  %v3019_v13 = vadd.f32 %v3781_v17, %v3670_v2  ;;  %v3784_v46 = vadd.f32 %v3783_v20, %v3782_v41 }
 0x599   : > { %4377 = vrcp.f32 %v3051_v42  ;;  %v3052_v12 = vadd.f32 1.0, %v4368_v24 }
 0x59a   : > { %v3693_v55 = vmul.f32 -1.442695, %v3019_v13  ;;  %v3022_v57 = vadd.f32 %v3784_v46, %v3670_v2 }
 0x59b   : > { %v4370_v31 = vpop.eup %4369  ;;  %4379 = vrcp.f32 %v3052_v12 }
 0x59c   : > { %4381 = vpow2.f32 %v3693_v55  ;;  %v3694_v58 = vmul.f32 -1.442695, %v3022_v57  ;;  %v3081_v25 = vsub.f32 1.0, %v4370_v31  ;;  %v3073_v6 = vmul.f32 %v4370_v31, %v2801_v14 }
 0x59d   : > { %v4372_v32 = vpop.eup %4371 }
 0x59e   : > { %v4374_v1 = vpop.eup %4373  ;;  %4383 = vpow2.f32 %v3694_v58  ;;  %v3082_v34 = vsub.f32 1.0, %v4372_v32  ;;  %v3089_v38 = vmul.f32 %v3081_v25, %v2802_v49  ;;  %v3074_v2 = vmul.f32 %v4372_v32, %v2803_v51 }
 0x59f   : > { %v3053_v39 = vadd.f32 1.0, %v4374_v1 }
 0x5a0   : > { %v4376_v50 = vpop.eup %4375  ;;  %v3090_v63 = vmul.f32 %v3082_v34, %v2804_v11  ;;  %v3097_v0 = vadd.f32 %v3089_v38, %v3073_v6 }
 0x5a1   : > { %4385 = vrcp.f32 %v3053_v39  ;;  %v3054_v35 = vadd.f32 1.0, %v4376_v50 }
 0x5a2   : > { %v3098_v48 = vadd.f32 %v3090_v63, %v3074_v2 }
 0x5a3   : > { %v4378_v36 = vpop.eup %4377  ;;  %4387 = vrcp.f32 %v3054_v35 }
 0x5a4   : > { %v3083_v8 = vsub.f32 1.0, %v4378_v36  ;;  %v3105_v3 = vpack.c.bf16 %v3098_v48, %v3097_v0  ;;  %v3075_v53 = vmul.f32 %v4378_v36, %v2805_v21 }
 0x5a5   : > { %v4380_v49 = vpop.eup %4379 }
 0x5a6   : > { %v4382_v9 = vpop.eup %4381  ;;  %v3084_v10 = vsub.f32 1.0, %v4380_v49  ;;  %3813 = vmatprep.mubr.bf16.mxu1 %v3105_v3  ;;  %v3091_v4 = vmul.f32 %v3083_v8, %v2806_v23  ;;  %v3076_v11 = vmul.f32 %v4380_v49, %v2807_v44 }
 0x5a7   : > { %v3055_v7 = vadd.f32 1.0, %v4382_v9 }
 0x5a8   : > { %v4384_v51 = vpop.eup %4383  ;;  %v3092_v14 = vmul.f32 %v3084_v10, %v2808_v45  ;;  %v3099_v37 = vadd.f32 %v3091_v4, %v3075_v53 }
 0x5a9   : > { %4389 = vrcp.f32 %v3055_v7  ;;  %v3056_v15 = vadd.f32 1.0, %v4384_v51 }
 0x5aa   : > { %v3100_v19 = vadd.f32 %v3092_v14, %v3076_v11 }
 0x5ab   : > { %v4386_v17 = vpop.eup %4385  ;;  %4391 = vrcp.f32 %v3056_v15 }
 0x5ac   : > { %v3106_v41 = vpack.c.bf16 %v3100_v19, %v3099_v37  ;;  %v3085_v40 = vsub.f32 1.0, %v4386_v17  ;;  %v3077_v18 = vmul.f32 %v4386_v17, %v2809_v29  ;;  %v3695_v29 = vld [vmem:[#allocation10] ss:$0 sm:$0xff] }
 0x5ad   : > { %v4388_v23 = vpop.eup %4387 }
 0x5ae   : > { %3814 = vmatmul.mubr.bf16.vlgmr.msra.gmra.mrb[48].mxu1 %v3106_v41  ;;  %v3086_v42 = vsub.f32 1.0, %v4388_v23  ;;  %v3093_v22 = vmul.f32 %v3085_v40, %v2810_v30  ;;  %v3078_v43 = vmul.f32 %v4388_v23, %v2811_v28 }
 0x5b0   : > { %v3094_v44 = vmul.f32 %v3086_v42, %v2812_v47  ;;  %v3101_v45 = vadd.f32 %v3093_v22, %v3077_v18 }
 0x5b2   : > { %v3102_v21 = vadd.f32 %v3094_v44, %v3078_v43 }
 0x5b3   : > { %v4390_v20 = vpop.eup %4389 }
 0x5b4   : > { %v3107_v24 = vpack.c.bf16 %v3102_v21, %v3101_v45  ;;  %v3087_v13 = vsub.f32 1.0, %v4390_v20  ;;  %v3079_v16 = vmul.f32 %v4390_v20, %v2813_v62 }
 0x5b5   : > { %v4392_v46 = vpop.eup %4391 }
 0x5b6   : > { %3817 = vmatprep.mubr.bf16.mxu1 %v3107_v24  ;;  %v3088_v12 = vsub.f32 1.0, %v4392_v46  ;;  %v3095_v54 = vmul.f32 %v3087_v13, %v2814_v33  ;;  %v3080_v27 = vmul.f32 %v4392_v46, %v2815_v60 }
 0x5b8   : > { %v3096_v56 = vmul.f32 %v3088_v12, %v2816_v61  ;;  %v3103_v28 = vadd.f32 %v3095_v54, %v3079_v16 }
 0x5ba   : > { %v3104_v30 = vadd.f32 %v3096_v56, %v3080_v27 }
 0x5bc   : > { %v3108_v47 = vpack.c.bf16 %v3104_v30, %v3103_v28 }
 0x5be   : > { %3818 = vmatmul.mubr.bf16.gmra.mrb[52].mxu1 %v3108_v47 }
 0x681   : > { %v3815_v55 = vpop.f32.mrb[48].mxu1 }
 0x682   : > { %v3223_v57 = vadd.f32 %v3815_v55, %v3695_v29  ;;  %v3214_v31 = vpop.f32.mrb[49].mxu1 }
 0x683   : > { %v3215_v5 = vadd.f32 %v3695_v29, %v3214_v31  ;;  %v3816_v33 = vpop.f32.mrb[50].mxu1 }
 0x684   : > { %v3226_v58 = vadd.f32 %v3816_v33, %v3695_v29  ;;  %v3217_v59 = vpop.f32.mrb[51].mxu1  ;;  %v3247_v25 = vmax.f32 %v3223_v57, 0.0 }
 0x685   : > { %v3218_v62 = vadd.f32 %v3695_v29, %v3217_v59  ;;  %v3245_v60 = vmax.f32 %v3215_v5, 0.0 }
 0x686   : > { %v3248_v26 = vmax.f32 %v3226_v58, 0.0 }
 0x687   : > { %v3246_v52 = vmax.f32 %v3218_v62, 0.0 }
 0x688   : > { %v3730_v61 = vpack.c.bf16 %v3248_v26, %v3247_v25 }
 0x689   : > { %v3725_v32 = vpack.c.bf16 %v3246_v52, %v3245_v60 }
 0x68a   : > { %3742 = vst [vmem:[%s497_s27 + $0x8] sm:$0xff] %v3730_v61  }
 0x68b   : > { %3726 = vst [vmem:[%s497_s27] sm:$0xff] %v3725_v32  }
 0x691   : > { %v3819_v1 = vpop.f32.mrb[52].mxu1 }
 0x692   : > { %v3239_v34 = vadd.f32 %v3819_v1, %v3695_v29  ;;  %v3230_v38 = vpop.f32.mrb[53].mxu1 }
 0x693   : > { %v3231_v39 = vadd.f32 %v3695_v29, %v3230_v38  ;;  %v3820_v50 = vpop.f32.mrb[54].mxu1 }
 0x694   : > { %v3242_v6 = vadd.f32 %v3820_v50, %v3695_v29  ;;  %v3233_v2 = vpop.f32.mrb[55].mxu1  ;;  %v3251_v35 = vmax.f32 %v3239_v34, 0.0 }
 0x695   : > { %v3234_v63 = vadd.f32 %v3695_v29, %v3233_v2  ;;  %v3249_v48 = vmax.f32 %v3231_v39, 0.0 }
 0x696   : > { %v3252_v0 = vmax.f32 %v3242_v6, 0.0 }
 0x697   : > { %v3250_v36 = vmax.f32 %v3234_v63, 0.0 }
 0x698   : > { %v3740_v8 = vpack.c.bf16 %v3252_v0, %v3251_v35 }
 0x699   : > { %v3735_v3 = vpack.c.bf16 %v3250_v36, %v3249_v48 }
 0x69a   : > { %3744 = vst [vmem:[%s497_s27 + $0x18] sm:$0xff] %v3740_v8  }
 0x69b   : > { %3743 = vst [vmem:[%s497_s27 + $0x10] sm:$0xff] %v3735_v3  }
 0x69c PF: > { %s26_s21 = sadd.s32 1, %s4583_s21  }
 0x69d   : > { %p23_p7 = scmp.ge.s32.totalorder %s26_s21, 4  }
 0x69f   :  { %25 = sbr.rel (!%p23_p7) target bundleno = 7 (0x7), region = 123 }
 0x6a6   :  { %3315 = vsyncpa [#allocation3], 1 }
 0x6a7   :  { %3317 = vsyncpa [#allocation3 + $0x1], 1 }
 0x6a8   :  { %3318 = vsyncpa [#allocation5], 1 }
 0x6a9   :  { %3319 = vsyncpa [#allocation8], 1 }
 0x6aa   :  { %3320 = vsyncpa [#allocation11], 1 }

</bundles_post_ra>
